<compile_context>
chip_gen: v5e
topology: v5e:2x2
jax: 0.10.0
libtpu: 0.0.40
codegen_flags: <defaults>
</compile_context>

<pallas_src>
import math

import numpy as np
import jax
import jax.numpy as jnp
from jax import lax
from jax.experimental import pallas as pl
from jax.experimental.pallas import tpu as pltpu

BN_EPS = 1e-5


# ----------------------------- fused kernel --------------------------------
def _make_dncnn_kernel(N, L, C, n_mid):
    NL = N * L
    inv_n = 1.0 / NL

    def kernel(x_ref, wf_ref, wm_ref, gm_ref, bm_ref, wl_ref, o_ref,
               act_ref, xs_ref):
        # Lane masks guarding sample boundaries (batch is folded into lanes).
        lane = lax.broadcasted_iota(jnp.int32, (1, NL), 1)
        keep_l = (lane % L != 0).astype(jnp.float32)       # x[l-1] valid
        keep_r = (lane % L != L - 1).astype(jnp.float32)   # x[l+1] valid

        def taps(a):
            # pltpu.roll requires non-negative shifts: left-shift-by-1 is a
            # roll by NL-1; cross-sample wraparound is masked to zero.
            a_m1 = pltpu.roll(a, shift=1, axis=1) * keep_l
            a_p1 = pltpu.roll(a, shift=NL - 1, axis=1) * keep_r
            return a_m1, a_p1

        # ---- layer 0: Conv1d(1 -> C, k=3, pad=1) + ReLU  (K=1 -> VPU) ----
        x = x_ref[...]                                   # [1, NL]
        x_m1, x_p1 = taps(x)
        a = (wf_ref[0] * x_m1 + wf_ref[1] * x + wf_ref[2] * x_p1)  # [C, NL]
        act_ref[...] = jnp.maximum(a, 0.0)

        # ---- layers 1..n_mid: Conv(C->C, k=3) + BN(train) + ReLU ----------
        def body(i, carry):
            a = act_ref[...]                             # [C, NL]
            a_m1, a_p1 = taps(a)
            xs_ref[0:C, :] = a_m1
            xs_ref[C:2 * C, :] = a
            xs_ref[2 * C:3 * C, :] = a_p1
            # Single K=3C matmul fuses the three taps.
            y = jnp.dot(wm_ref[i], xs_ref[...],
                        preferred_element_type=jnp.float32)   # [C, NL]
            # BatchNorm1d training-mode batch stats (biased variance),
            # computed in one reduction pass.
            mean = jnp.sum(y, axis=1, keepdims=True) * inv_n
            ex2 = jnp.sum(y * y, axis=1, keepdims=True) * inv_n
            var = ex2 - mean * mean
            scale = lax.rsqrt(var + BN_EPS) * gm_ref[i]        # [C, 1]
            y = (y - mean) * scale + bm_ref[i]
            act_ref[...] = jnp.maximum(y, 0.0)
            return carry

        lax.fori_loop(0, n_mid, body, 0)

        # ---- last layer: Conv1d(C -> 1, k=3)  (M=1 -> VPU mul + XLU reduce)
        a = act_ref[...]
        a_m1, a_p1 = taps(a)
        xs_ref[0:C, :] = a_m1
        xs_ref[C:2 * C, :] = a
        xs_ref[2 * C:3 * C, :] = a_p1
        o_ref[...] = jnp.sum(wl_ref[...] * xs_ref[...], axis=0, keepdims=True)

    return kernel


# ----------------------------- wrapper --------------------------------------
def _pack_params(params):
    """Pack per-layer params into the fused-kernel argument layout."""
    w_first = params[0][0]                       # [C, 1, 3]
    C = w_first.shape[0]
    wf = jnp.transpose(w_first, (2, 0, 1))       # [3, C, 1]
    mids = params[1:-1]
    wm = jnp.stack([jnp.concatenate([w[:, :, 0], w[:, :, 1], w[:, :, 2]],
                                    axis=1) for (w, _, _, _) in mids])  # [n_mid, C, 3C]
    gm = jnp.stack([g for (_, g, _, _) in mids])  # [n_mid, C, 1]
    bm = jnp.stack([b for (_, _, b, _) in mids])  # [n_mid, C, 1]
    w_last = params[-1][0]                        # [1, C, 3]
    wl = jnp.concatenate([w_last[0, :, 0], w_last[0, :, 1], w_last[0, :, 2]],
                         axis=0)[:, None]         # [3C, 1]
    return wf, wm, gm, bm, wl, C


def dncnn_forward(x, params):
    """x: [N, 1, L] float32; params from init_dncnn_params()."""
    N, c_in, L = x.shape
    assert c_in == 1, "kernel specialized to num_channels == 1 (DnCNN default)"
    wf, wm, gm, bm, wl, C = _pack_params(params)
    n_mid = wm.shape[0]
    NL = N * L

    x2d = jnp.transpose(x, (1, 0, 2)).reshape(1, NL)   # [1, N*L]

    kernel = _make_dncnn_kernel(N, L, C, n_mid)
    vmem = pl.BlockSpec(memory_space=pltpu.MemorySpace.VMEM)
    out2d = pl.pallas_call(
        kernel,
        out_shape=jax.ShapeDtypeStruct((1, NL), jnp.float32),
        in_specs=[vmem] * 6,
        out_specs=vmem,
        scratch_shapes=[pltpu.VMEM((C, NL), jnp.float32),       # activation
                        pltpu.VMEM((3 * C, NL), jnp.float32)],  # stacked taps
    )(x2d, wf, wm, gm, bm, wl)

    return jnp.transpose(out2d.reshape(1, N, L), (1, 0, 2))     # [N, 1, L]


# ----------------------------- parameter init -------------------------------
def init_dncnn_params(key, num_channels=1, num_layers=17, kernel_size=3,
                      num_filters=64):
    """Deterministic parameter init mirroring init_weights() in model.py."""
    io = ([(num_channels, num_filters)]
          + [(num_filters, num_filters)] * (num_layers - 2)
          + [(num_filters, num_channels)])
    keys = jax.random.split(key, 2 * num_layers)
    params = []
    for i, (cin, cout) in enumerate(io):
        # kaiming_normal_(a=0, mode='fan_in'): std = sqrt(2 / (cin * k))
        fan_in = cin * kernel_size
        std = math.sqrt(2.0 / fan_in)
        w = jax.random.normal(keys[2 * i], (cout, cin, kernel_size),
                              jnp.float32) * std
        has_bn = 0 < i < num_layers - 1
        if has_bn:
            g = jnp.clip(
                jax.random.normal(keys[2 * i + 1], (cout, 1), jnp.float32)
                * math.sqrt(2.0 / 9.0 / 64.0), -0.025, 0.025)
        else:
            g = jnp.ones((cout, 1), jnp.float32)  # unused by the kernel
        b = jnp.zeros((cout, 1), jnp.float32)
        params.append((w, g, b, has_bn))
    return params


# ----------------------------- pure-JAX reference ---------------------------
def _ref_forward(x, params):
    dn = ("NCW", "OIW", "NCW")
    n_layers = len(params)
    for i, (w, g, b, has_bn) in enumerate(params):
        x = lax.conv_general_dilated(x, w, window_strides=(1,),
                                     padding=[(1, 1)], dimension_numbers=dn)
        if has_bn:
            mean = jnp.mean(x, axis=(0, 2), keepdims=True)
            var = jnp.mean((x - mean) ** 2, axis=(0, 2), keepdims=True)
            x = (x - mean) * lax.rsqrt(var + BN_EPS) * g[None] + b[None]
        if i < n_layers - 1:
            x = jnp.maximum(x, 0.0)
    return x


if __name__ == "__main__":
    key = jax.random.PRNGKey(0)
    k_param, k_x = jax.random.split(key)

    # Small shapes consistent with DnCNN defaults: Conv1d input is (N, C, L).
    N, C, L = 2, 1, 128
    x = jax.random.normal(k_x, (N, C, L), jnp.float32)

    params = init_dncnn_params(k_param, num_channels=C, num_layers=17,
                               kernel_size=3, num_filters=64)

    out = dncnn_forward(x, params)
    out = jax.block_until_ready(out)
    assert out.shape == (N, C, L), out.shape

    ref = jax.block_until_ready(_ref_forward(x, params))
    np.testing.assert_allclose(np.asarray(out), np.asarray(ref),
                               rtol=1e-3, atol=1e-4)

    print("KERNEL_OK")
</pallas_src>

<mosaic_0001>
module attributes {stable_mosaic.version = 11 : i64} {
  func.func @kernel(%arg0: memref<1x256xf32, #tpu.memory_space<vmem>>, %arg1: memref<3x64x1xf32, #tpu.memory_space<vmem>>, %arg2: memref<15x64x192xf32, #tpu.memory_space<vmem>>, %arg3: memref<15x64x1xf32, #tpu.memory_space<vmem>>, %arg4: memref<15x64x1xf32, #tpu.memory_space<vmem>>, %arg5: memref<192x1xf32, #tpu.memory_space<vmem>>, %arg6: memref<1x256xf32, #tpu.memory_space<vmem>>, %arg7: memref<64x256xf32, #tpu.memory_space<vmem>>, %arg8: memref<192x256xf32, #tpu.memory_space<vmem>>) attributes {dimension_semantics = [], scalar_prefetch = 0 : i64, scratch_operands = 2 : i64, tpu.core_type = #tpu.core_type<tc>} {
    %0 = tpu.iota {dimensions = array<i32: 1>} : vector<1x256xi32>
    %c128_i32 = arith.constant 128 : i32
    %c0_i32 = arith.constant 0 : i32
    %1 = arith.cmpi eq, %c128_i32, %c0_i32 : i32
    %c1_i32 = arith.constant 1 : i32
    %2 = arith.select %1, %c1_i32, %c128_i32 : i32
    %3 = vector.broadcast %2 : i32 to vector<1x256xi32>
    %4 = arith.remsi %0, %3 : vector<1x256xi32>
    %c0_i32_0 = arith.constant 0 : i32
    %5 = vector.broadcast %c0_i32_0 : i32 to vector<1x256xi32>
    %6 = arith.cmpi ne, %4, %5 : vector<1x256xi32>
    %c0_i32_1 = arith.constant 0 : i32
    %7 = vector.broadcast %c0_i32_1 : i32 to vector<1x256xi32>
    %8 = arith.cmpi slt, %4, %7 : vector<1x256xi32>
    %c0_i32_2 = arith.constant 0 : i32
    %9 = arith.cmpi slt, %2, %c0_i32_2 : i32
    %10 = vector.broadcast %9 : i1 to vector<1x256xi1>
    %11 = vector.broadcast %10 : vector<1x256xi1> to vector<1x256xi1>
    %12 = arith.xori %8, %11 : vector<1x256xi1>
    %13 = arith.andi %12, %6 : vector<1x256xi1>
    %14 = vector.broadcast %2 : i32 to vector<1x256xi32>
    %15 = arith.addi %4, %14 : vector<1x256xi32>
    %16 = arith.select %13, %15, %4 : vector<1x256xi1>, vector<1x256xi32>
    %c0_i32_3 = arith.constant 0 : i32
    %17 = vector.broadcast %c0_i32_3 : i32 to vector<1x256xi32>
    %18 = arith.cmpi ne, %16, %17 : vector<1x256xi32>
    %19 = arith.extui %18 : vector<1x256xi1> to vector<1x256xi32>
    %20 = arith.sitofp %19 : vector<1x256xi32> to vector<1x256xf32>
    %c128_i32_4 = arith.constant 128 : i32
    %c0_i32_5 = arith.constant 0 : i32
    %21 = arith.cmpi eq, %c128_i32_4, %c0_i32_5 : i32
    %c1_i32_6 = arith.constant 1 : i32
    %22 = arith.select %21, %c1_i32_6, %c128_i32_4 : i32
    %23 = vector.broadcast %22 : i32 to vector<1x256xi32>
    %24 = arith.remsi %0, %23 : vector<1x256xi32>
    %c0_i32_7 = arith.constant 0 : i32
    %25 = vector.broadcast %c0_i32_7 : i32 to vector<1x256xi32>
    %26 = arith.cmpi ne, %24, %25 : vector<1x256xi32>
    %c0_i32_8 = arith.constant 0 : i32
    %27 = vector.broadcast %c0_i32_8 : i32 to vector<1x256xi32>
    %28 = arith.cmpi slt, %24, %27 : vector<1x256xi32>
    %c0_i32_9 = arith.constant 0 : i32
    %29 = arith.cmpi slt, %22, %c0_i32_9 : i32
    %30 = vector.broadcast %29 : i1 to vector<1x256xi1>
    %31 = vector.broadcast %30 : vector<1x256xi1> to vector<1x256xi1>
    %32 = arith.xori %28, %31 : vector<1x256xi1>
    %33 = arith.andi %32, %26 : vector<1x256xi1>
    %34 = vector.broadcast %22 : i32 to vector<1x256xi32>
    %35 = arith.addi %24, %34 : vector<1x256xi32>
    %36 = arith.select %33, %35, %24 : vector<1x256xi1>, vector<1x256xi32>
    %c127_i32 = arith.constant 127 : i32
    %37 = vector.broadcast %c127_i32 : i32 to vector<1x256xi32>
    %38 = arith.cmpi ne, %36, %37 : vector<1x256xi32>
    %39 = arith.extui %38 : vector<1x256xi1> to vector<1x256xi32>
    %40 = arith.sitofp %39 : vector<1x256xi32> to vector<1x256xf32>
    %c0 = arith.constant 0 : index
    %c0_10 = arith.constant 0 : index
    %41 = vector.load %arg0[%c0, %c0_10] : memref<1x256xf32, #tpu.memory_space<vmem>>, vector<1x256xf32>
    %c1_i32_11 = arith.constant 1 : i32
    %42 = tpu.dynamic_rotate %41 by %c1_i32_11 dim 1 : vector<1x256xf32>, i32 -> vector<1x256xf32>
    %43 = arith.mulf %42, %20 : vector<1x256xf32>
    %c255_i32 = arith.constant 255 : i32
    %44 = tpu.dynamic_rotate %41 by %c255_i32 dim 1 : vector<1x256xf32>, i32 -> vector<1x256xf32>
    %45 = arith.mulf %44, %40 : vector<1x256xf32>
    %c0_12 = arith.constant 0 : index
    %c0_13 = arith.constant 0 : index
    %c0_14 = arith.constant 0 : index
    %46 = vector.load %arg1[%c0_12, %c0_13, %c0_14] : memref<3x64x1xf32, #tpu.memory_space<vmem>>, vector<1x64x1xf32>
    %47 = vector.shape_cast %46 : vector<1x64x1xf32> to vector<64x1xf32>
    %48 = vector.broadcast %47 : vector<64x1xf32> to vector<64x256xf32>
    %49 = vector.broadcast %43 : vector<1x256xf32> to vector<64x256xf32>
    %50 = arith.mulf %48, %49 : vector<64x256xf32>
    %c1 = arith.constant 1 : index
    %c0_15 = arith.constant 0 : index
    %c0_16 = arith.constant 0 : index
    %51 = vector.load %arg1[%c1, %c0_15, %c0_16] : memref<3x64x1xf32, #tpu.memory_space<vmem>>, vector<1x64x1xf32>
    %52 = vector.shape_cast %51 : vector<1x64x1xf32> to vector<64x1xf32>
    %53 = vector.broadcast %52 : vector<64x1xf32> to vector<64x256xf32>
    %54 = vector.broadcast %41 : vector<1x256xf32> to vector<64x256xf32>
    %55 = arith.mulf %53, %54 : vector<64x256xf32>
    %56 = arith.addf %50, %55 : vector<64x256xf32>
    %c2 = arith.constant 2 : index
    %c0_17 = arith.constant 0 : index
    %c0_18 = arith.constant 0 : index
    %57 = vector.load %arg1[%c2, %c0_17, %c0_18] : memref<3x64x1xf32, #tpu.memory_space<vmem>>, vector<1x64x1xf32>
    %58 = vector.shape_cast %57 : vector<1x64x1xf32> to vector<64x1xf32>
    %59 = vector.broadcast %58 : vector<64x1xf32> to vector<64x256xf32>
    %60 = vector.broadcast %45 : vector<1x256xf32> to vector<64x256xf32>
    %61 = arith.mulf %59, %60 : vector<64x256xf32>
    %62 = arith.addf %56, %61 : vector<64x256xf32>
    %cst = arith.constant 0.000000e+00 : f32
    %63 = vector.broadcast %cst : f32 to vector<64x256xf32>
    %64 = arith.maximumf %62, %63 : vector<64x256xf32>
    %c0_19 = arith.constant 0 : index
    %c0_20 = arith.constant 0 : index
    %65 = vector.load %arg7[%c0_19, %c0_20] : memref<64x256xf32, #tpu.memory_space<vmem>>, vector<64x256xf32>
    tpu.vector_store %arg7[%c0_19, %c0_20], %64 {strides = array<i32>} : memref<64x256xf32, #tpu.memory_space<vmem>>, vector<64x256xf32>,
    %c0_i32_21 = arith.constant 0 : i32
    %c15_i32 = arith.constant 15 : i32
    %66 = arith.addi %c0_i32_21, %c15_i32 : i32
    %c1_i32_22 = arith.constant 1 : i32
    scf.for %arg9 = %c0_i32_21 to %66 step %c1_i32_22  : i32 {
      %c0_39 = arith.constant 0 : index
      %c0_40 = arith.constant 0 : index
      %84 = vector.load %arg7[%c0_39, %c0_40] : memref<64x256xf32, #tpu.memory_space<vmem>>, vector<64x256xf32>
      %c1_i32_41 = arith.constant 1 : i32
      %85 = tpu.dynamic_rotate %84 by %c1_i32_41 dim 1 : vector<64x256xf32>, i32 -> vector<64x256xf32>
      %86 = vector.broadcast %20 : vector<1x256xf32> to vector<64x256xf32>
      %87 = arith.mulf %85, %86 : vector<64x256xf32>
      %c255_i32_42 = arith.constant 255 : i32
      %88 = tpu.dynamic_rotate %84 by %c255_i32_42 dim 1 : vector<64x256xf32>, i32 -> vector<64x256xf32>
      %89 = vector.broadcast %40 : vector<1x256xf32> to vector<64x256xf32>
      %90 = arith.mulf %88, %89 : vector<64x256xf32>
      %c0_43 = arith.constant 0 : index
      %c0_44 = arith.constant 0 : index
      %91 = vector.load %arg8[%c0_43, %c0_44] : memref<192x256xf32, #tpu.memory_space<vmem>>, vector<64x256xf32>
      tpu.vector_store %arg8[%c0_43, %c0_44], %87 {strides = array<i32>} : memref<192x256xf32, #tpu.memory_space<vmem>>, vector<64x256xf32>,
      %c64_45 = arith.constant 64 : index
      %c0_46 = arith.constant 0 : index
      %92 = vector.load %arg8[%c64_45, %c0_46] : memref<192x256xf32, #tpu.memory_space<vmem>>, vector<64x256xf32>
      tpu.vector_store %arg8[%c64_45, %c0_46], %84 {strides = array<i32>} : memref<192x256xf32, #tpu.memory_space<vmem>>, vector<64x256xf32>,
      %c128_47 = arith.constant 128 : index
      %c0_48 = arith.constant 0 : index
      %93 = vector.load %arg8[%c128_47, %c0_48] : memref<192x256xf32, #tpu.memory_space<vmem>>, vector<64x256xf32>
      tpu.vector_store %arg8[%c128_47, %c0_48], %90 {strides = array<i32>} : memref<192x256xf32, #tpu.memory_space<vmem>>, vector<64x256xf32>,
      %94 = arith.index_cast %arg9 : i32 to index
      %c0_49 = arith.constant 0 : index
      %c0_50 = arith.constant 0 : index
      %95 = vector.load %arg2[%94, %c0_49, %c0_50] : memref<15x64x192xf32, #tpu.memory_space<vmem>>, vector<1x64x192xf32>
      %96 = vector.shape_cast %95 : vector<1x64x192xf32> to vector<64x192xf32>
      %c0_51 = arith.constant 0 : index
      %c0_52 = arith.constant 0 : index
      %97 = vector.load %arg8[%c0_51, %c0_52] : memref<192x256xf32, #tpu.memory_space<vmem>>, vector<192x256xf32>
      %cst_53 = arith.constant dense<0.000000e+00> : vector<64x256xf32>
      %98 = tpu.matmul %96, %97, %cst_53 {dimension_numbers = #tpu.dot_dimension_numbers<[1], [0], [0], [1], [0, 0, 1, 1], [], []>} : vector<64x192xf32>, vector<192x256xf32>, vector<64x256xf32> -> vector<64x256xf32>
      %cst_54 = arith.constant dense<0.000000e+00> : vector<64xf32>
      %99 = vector.multi_reduction <add>, %98, %cst_54 [1] : vector<64x256xf32> to vector<64xf32>
      %100 = vector.shape_cast %99 : vector<64xf32> to vector<64x1xf32>
      %cst_55 = arith.constant 3.906250e-03 : f32
      %101 = vector.broadcast %cst_55 : f32 to vector<64x1xf32>
      %102 = arith.mulf %100, %101 : vector<64x1xf32>
      %103 = arith.mulf %98, %98 : vector<64x256xf32>
      %cst_56 = arith.constant dense<0.000000e+00> : vector<64xf32>
      %104 = vector.multi_reduction <add>, %103, %cst_56 [1] : vector<64x256xf32> to vector<64xf32>
      %105 = vector.shape_cast %104 : vector<64xf32> to vector<64x1xf32>
      %cst_57 = arith.constant 3.906250e-03 : f32
      %106 = vector.broadcast %cst_57 : f32 to vector<64x1xf32>
      %107 = arith.mulf %105, %106 : vector<64x1xf32>
      %108 = arith.mulf %102, %102 : vector<64x1xf32>
      %109 = arith.subf %107, %108 : vector<64x1xf32>
      %cst_58 = arith.constant 9.99999974E-6 : f32
      %110 = vector.broadcast %cst_58 : f32 to vector<64x1xf32>
      %111 = arith.addf %109, %110 : vector<64x1xf32>
      %112 = math.rsqrt %111 : vector<64x1xf32>
      %113 = arith.index_cast %arg9 : i32 to index
      %c0_59 = arith.constant 0 : index
      %c0_60 = arith.constant 0 : index
      %114 = vector.load %arg3[%113, %c0_59, %c0_60] : memref<15x64x1xf32, #tpu.memory_space<vmem>>, vector<1x64x1xf32>
      %115 = vector.shape_cast %114 : vector<1x64x1xf32> to vector<64x1xf32>
      %116 = arith.mulf %112, %115 : vector<64x1xf32>
      %117 = vector.broadcast %102 : vector<64x1xf32> to vector<64x256xf32>
      %118 = arith.subf %98, %117 : vector<64x256xf32>
      %119 = vector.broadcast %116 : vector<64x1xf32> to vector<64x256xf32>
      %120 = arith.mulf %118, %119 : vector<64x256xf32>
      %121 = arith.index_cast %arg9 : i32 to index
      %c0_61 = arith.constant 0 : index
      %c0_62 = arith.constant 0 : index
      %122 = vector.load %arg4[%121, %c0_61, %c0_62] : memref<15x64x1xf32, #tpu.memory_space<vmem>>, vector<1x64x1xf32>
      %123 = vector.shape_cast %122 : vector<1x64x1xf32> to vector<64x1xf32>
      %124 = vector.broadcast %123 : vector<64x1xf32> to vector<64x256xf32>
      %125 = arith.addf %120, %124 : vector<64x256xf32>
      %cst_63 = arith.constant 0.000000e+00 : f32
      %126 = vector.broadcast %cst_63 : f32 to vector<64x256xf32>
      %127 = arith.maximumf %125, %126 : vector<64x256xf32>
      %c0_64 = arith.constant 0 : index
      %c0_65 = arith.constant 0 : index
      %128 = vector.load %arg7[%c0_64, %c0_65] : memref<64x256xf32, #tpu.memory_space<vmem>>, vector<64x256xf32>
      tpu.vector_store %arg7[%c0_64, %c0_65], %127 {strides = array<i32>} : memref<64x256xf32, #tpu.memory_space<vmem>>, vector<64x256xf32>,
    }
    %c15_i32_23 = arith.constant 15 : i32
    %c0_24 = arith.constant 0 : index
    %c0_25 = arith.constant 0 : index
    %67 = vector.load %arg7[%c0_24, %c0_25] : memref<64x256xf32, #tpu.memory_space<vmem>>, vector<64x256xf32>
    %c1_i32_26 = arith.constant 1 : i32
    %68 = tpu.dynamic_rotate %67 by %c1_i32_26 dim 1 : vector<64x256xf32>, i32 -> vector<64x256xf32>
    %69 = vector.broadcast %20 : vector<1x256xf32> to vector<64x256xf32>
    %70 = arith.mulf %68, %69 : vector<64x256xf32>
    %c255_i32_27 = arith.constant 255 : i32
    %71 = tpu.dynamic_rotate %67 by %c255_i32_27 dim 1 : vector<64x256xf32>, i32 -> vector<64x256xf32>
    %72 = vector.broadcast %40 : vector<1x256xf32> to vector<64x256xf32>
    %73 = arith.mulf %71, %72 : vector<64x256xf32>
    %c0_28 = arith.constant 0 : index
    %c0_29 = arith.constant 0 : index
    %74 = vector.load %arg8[%c0_28, %c0_29] : memref<192x256xf32, #tpu.memory_space<vmem>>, vector<64x256xf32>
    tpu.vector_store %arg8[%c0_28, %c0_29], %70 {strides = array<i32>} : memref<192x256xf32, #tpu.memory_space<vmem>>, vector<64x256xf32>,
    %c64 = arith.constant 64 : index
    %c0_30 = arith.constant 0 : index
    %75 = vector.load %arg8[%c64, %c0_30] : memref<192x256xf32, #tpu.memory_space<vmem>>, vector<64x256xf32>
    tpu.vector_store %arg8[%c64, %c0_30], %67 {strides = array<i32>} : memref<192x256xf32, #tpu.memory_space<vmem>>, vector<64x256xf32>,
    %c128 = arith.constant 128 : index
    %c0_31 = arith.constant 0 : index
    %76 = vector.load %arg8[%c128, %c0_31] : memref<192x256xf32, #tpu.memory_space<vmem>>, vector<64x256xf32>
    tpu.vector_store %arg8[%c128, %c0_31], %73 {strides = array<i32>} : memref<192x256xf32, #tpu.memory_space<vmem>>, vector<64x256xf32>,
    %c0_32 = arith.constant 0 : index
    %c0_33 = arith.constant 0 : index
    %77 = vector.load %arg5[%c0_32, %c0_33] : memref<192x1xf32, #tpu.memory_space<vmem>>, vector<192x1xf32>
    %c0_34 = arith.constant 0 : index
    %c0_35 = arith.constant 0 : index
    %78 = vector.load %arg8[%c0_34, %c0_35] : memref<192x256xf32, #tpu.memory_space<vmem>>, vector<192x256xf32>
    %79 = vector.broadcast %77 : vector<192x1xf32> to vector<192x256xf32>
    %80 = arith.mulf %79, %78 : vector<192x256xf32>
    %cst_36 = arith.constant dense<0.000000e+00> : vector<256xf32>
    %81 = vector.multi_reduction <add>, %80, %cst_36 [0] : vector<192x256xf32> to vector<256xf32>
    %82 = vector.shape_cast %81 : vector<256xf32> to vector<1x256xf32>
    %c0_37 = arith.constant 0 : index
    %c0_38 = arith.constant 0 : index
    %83 = vector.load %arg6[%c0_37, %c0_38] : memref<1x256xf32, #tpu.memory_space<vmem>>, vector<1x256xf32>
    tpu.vector_store %arg6[%c0_37, %c0_38], %82 {strides = array<i32>} : memref<1x256xf32, #tpu.memory_space<vmem>>, vector<1x256xf32>,
    return
  }
}

</mosaic_0001>

<bundles_post_ra>
// kernel: tpu_custom_call.1
= control target key start
LH: loop header
LB: loop body
LE: loop exit
PB: predicated region body
PF: predicated region fallthrough
CT: control target
= control target key end

     0   :  { %v1817_v2 = vmov 0   ;;  %s1818_s25 = smov 127   ;;  %s1819_s26 = smov 1   ;;  %s2814_s0 = inlined_call_operand.vmem [shape: f32[1,256], index: 0, kind: input, shape index: {}]   ;;  %s2815_s1 = inlined_call_operand.vmem [shape: f32[3,64,1], index: 1, kind: input, shape index: {}]   ;;  %s2816_s2 = inlined_call_operand.vmem [shape: f32[15,64,192], index: 2, kind: input, shape index: {}]   ;;  %s2817_s3 = inlined_call_operand.vmem [shape: f32[15,64,1], index: 3, kind: input, shape index: {}]   ;;  %s2818_s4 = inlined_call_operand.vmem [shape: f32[15,64,1], index: 4, kind: input, shape index: {}]   ;;  %s2819_s5 = inlined_call_operand.vmem [shape: f32[192,1], index: 5, kind: input, shape index: {}]   ;;  %s2820_s6 = inlined_call_operand.hbm [shape: f32[1,256], index: 6, kind: output, shape index: {}]  }
   0x1   :  { %v87_v0 = vld [vmem:[%s2815_s1] sm:$0xff]  ;;  %1758 = vset.pattern.permute.xlu2 %v1817_v2  ;;  %1760 = vset.pattern.permute.xlu1 %v1817_v2 }
   0x2   :  { %v63_v1 = vld [vmem:[%s2814_s0] sm:$0x3]  ;;  %97 = vperm.xlu2 %1758, %v87_v0   ;;  %1759 = vset.pattern.permute.xlu0 %v1817_v2 }
   0x3   :  { %v1867_v3 = vperm.slane %v63_v1, 0 }
   0x5   :  { %78 = vrot.lane.b32.xlu1 %v1867_v3, %s1818_s25  ;;  %69 = vrot.lane.b32.xlu0 %v1867_v3, %s1819_s26 }
   0x6   :  { %11 = vsyncpa [#allocation5], 0  ;;  %v88_v4 = vld [vmem:[%s2815_s1 + $0x8] sm:$0xff]  ;;  %v1878_v5 = vperm.slane %v63_v1, 1  ;;  %v91_v6 = vld [vmem:[%s2815_s1 + $0x20] sm:$0xff]  ;;  %v2821_v34 = vlaneseq  ;;  %v1820_v45 = vmov 0.0  }
   0x7   :  { %v90_v7 = vld [vmem:[%s2815_s1 + $0x18] sm:$0xff]  ;;  %v89_v8 = vld [vmem:[%s2815_s1 + $0x10] sm:$0xff]  ;;  %v92_v10 = vld [vmem:[%s2815_s1 + $0x28] sm:$0xff] }
   0x8   :  { %v93_v9 = vld [vmem:[%s2815_s1 + $0x30] sm:$0xff]  ;;  %v94_v11 = vld [vmem:[%s2815_s1 + $0x38] sm:$0xff]  ;;  %v1707_v12 = vld [vmem:[%s2815_s1 + $0x48] sm:$0xff]  ;;  %v1961_v38 = vand.u32 127, %v2821_v34 }
   0x9   :  { %v1706_v13 = vld [vmem:[%s2815_s1 + $0x40] sm:$0xff]  ;;  %v1708_v14 = vld [vmem:[%s2815_s1 + $0x50] sm:$0xff]  ;;  %v1709_v16 = vld [vmem:[%s2815_s1 + $0x58] sm:$0xff] }
   0xa   :  { %102 = vperm.xlu2 %1758, %v88_v4   ;;  %v1710_v15 = vld [vmem:[%s2815_s1 + $0x60] sm:$0xff]  ;;  %v1711_v17 = vld [vmem:[%s2815_s1 + $0x68] sm:$0xff]  ;;  %v1713_v18 = vld [vmem:[%s2815_s1 + $0x78] sm:$0xff]  ;;  %v26_v39 = vadd.s32 128, %v1961_v38  ;;  %vm51_vm0 = vcmp.ne.s32.totalorder %v1961_v38, 0  ;;  %vm73_vm2 = vcmp.lt.s32.totalorder %v1961_v38, 1 }
   0xb   :  { %v1712_v19 = vld [vmem:[%s2815_s1 + $0x70] sm:$0xff]  ;;  %v1714_v20 = vld [vmem:[%s2815_s1 + $0x80] sm:$0xff]  ;;  %v1715_v22 = vld [vmem:[%s2815_s1 + $0x88] sm:$0xff]  ;;  %vm57_vm3 = vcmp.ne.s32.totalorder %v1961_v38, 127  ;;  %vm82_vm5 = vcmp.lt.s32.totalorder %v1961_v38, 127  ;;  %v1974_v46 = vsel %vm51_vm0, 1.0, %v1820_v45 }
   0xc   :  { %v1716_v21 = vld [vmem:[%s2815_s1 + $0x90] sm:$0xff]  ;;  %v1717_v23 = vld [vmem:[%s2815_s1 + $0x98] sm:$0xff]  ;;  %v1719_v24 = vld [vmem:[%s2815_s1 + $0xa8] sm:$0xff]  ;;  %v38_v43 = vand.u32 127, %v26_v39  ;;  %v1984_v52 = vsel %vm57_vm3, 1.0, %v1820_v45 }
   0xd   :  { %80 = vrot.lane.b32.xlu1 %v1878_v5, %s1818_s25  ;;  %71 = vrot.lane.b32.xlu0 %v1878_v5, %s1819_s26  ;;  %v1718_v25 = vld [vmem:[%s2815_s1 + $0xa0] sm:$0xff]  ;;  %v1720_v26 = vld [vmem:[%s2815_s1 + $0xb0] sm:$0xff] }
   0xe   :  { %v1721_v27 = vld [vmem:[%s2815_s1 + $0xb8] sm:$0xff]  ;;  %vm52_vm1 = vcmp.ne.s32.totalorder %v38_v43, 0  ;;  %vm58_vm4 = vcmp.ne.s32.totalorder %v38_v43, 127  ;;  %s2070_s1 = smov 0  }
   0xf   :  { %v1976_v47 = vsel %vm52_vm1, 1.0, %v1820_v45  ;;  %v1986_v53 = vsel %vm58_vm4, 1.0, %v1820_v45 }
  0x12   :  { %117 = vperm.xlu2 %1758, %v91_v6  }
  0x15   :  { %112 = vperm.xlu1 %1760, %v90_v7   ;;  %107 = vperm.xlu0 %1759, %v89_v8  }
  0x1a   :  { %127 = vperm.xlu2 %1758, %v93_v9  }
  0x1d   :  { %122 = vperm.xlu1 %1760, %v92_v10   ;;  %132 = vperm.xlu0 %1759, %v94_v11  }
  0x22   :  { %169 = vperm.xlu2 %1758, %v1707_v12  }
  0x25   :  { %164 = vperm.xlu1 %1760, %v1706_v13   ;;  %174 = vperm.xlu0 %1759, %v1708_v14  }
  0x2a   :  { %184 = vperm.xlu2 %1758, %v1710_v15  }
  0x2d   :  { %179 = vperm.xlu1 %1760, %v1709_v16   ;;  %189 = vperm.xlu0 %1759, %v1711_v17  }
  0x32   :  { %199 = vperm.xlu2 %1758, %v1713_v18  }
  0x35   :  { %194 = vperm.xlu1 %1760, %v1712_v19   ;;  %245 = vperm.xlu0 %1759, %v1714_v20  }
  0x3a   :  { %255 = vperm.xlu2 %1758, %v1716_v21  }
  0x3d   :  { %250 = vperm.xlu1 %1760, %v1715_v22   ;;  %260 = vperm.xlu0 %1759, %v1717_v23  }
  0x42   :  { %270 = vperm.xlu2 %1758, %v1719_v24  }
  0x45   :  { %265 = vperm.xlu1 %1760, %v1718_v25   ;;  %275 = vperm.xlu0 %1759, %v1720_v26  }
  0x4d   :  { %280 = vperm.xlu1 %1760, %v1721_v27  }
  0x5c   :  { %v1950_v28 = vpop.permute.xlu2 %97 }
  0x64   :  { %v1952_v29 = vpop.permute.xlu2 %102 }
  0x6c   :  { %v1954_v30 = vpop.permute.xlu2 %117 }
  0x74   :  { %v1956_v31 = vpop.permute.xlu2 %127 }
  0x77   :  { %v79_v32 = vpop.permute.xlu1 %78  ;;  %v70_v33 = vpop.permute.xlu0 %69 }
  0x7c   :  { %v1958_v35 = vpop.permute.xlu2 %169 }
  0x7f   :  { %v81_v36 = vpop.permute.xlu1 %80  ;;  %v72_v37 = vpop.permute.xlu0 %71 }
  0x80   :  { %v74_v48 = vsel %vm73_vm2, %v70_v33, %v72_v37  ;;  %v75_v49 = vsel %vm73_vm2, %v72_v37, %v70_v33  ;;  %v83_v54 = vsel %vm82_vm5, %v79_v32, %v81_v36  ;;  %v84_v55 = vsel %vm82_vm5, %v81_v36, %v79_v32 }
  0x81   :  { %v76_v56 = vmul.f32 %v1974_v46, %v75_v49  ;;  %v77_v57 = vmul.f32 %v1976_v47, %v74_v48  ;;  %v85_v58 = vmul.f32 %v1984_v52, %v83_v54  ;;  %v86_v59 = vmul.f32 %v1986_v53, %v84_v55 }
  0x83   :  { %v1996_v60 = vperm.slane %v76_v56, 0  ;;  %v1998_v61 = vperm.slane %v77_v57, 0  ;;  %v2000_v63 = vperm.slane %v85_v58, 0  ;;  %v2002_v0 = vperm.slane %v86_v59, 0 }
  0x84   :  { %v1964_v40 = vpop.permute.xlu2 %184 }
  0x85   :  { %v138_v43 = vmul.f32 %v1998_v61, %v1950_v28 }
  0x87   :  { %v1966_v41 = vpop.permute.xlu1 %112  ;;  %v108_v42 = vpop.permute.xlu0 %107 }
  0x88   :  { %v141_v6 = vmul.f32 %v1996_v60, %v108_v42  ;;  %v142_v7 = vmul.f32 %v1998_v61, %v108_v42  ;;  %v137_v42 = vmul.f32 %v1996_v60, %v1950_v28  ;;  %v139_v28 = vmul.f32 %v1996_v60, %v1952_v29 }
  0x8c   :  { %v1972_v44 = vpop.permute.xlu2 %199 }
  0x8f   :  { %v123_v50 = vpop.permute.xlu1 %122  ;;  %v1982_v51 = vpop.permute.xlu0 %132 }
  0x90   :  { %v147_v21 = vmul.f32 %v1996_v60, %v123_v50  ;;  %v148_v22 = vmul.f32 %v1998_v61, %v123_v50 }
  0x94   :  { %v256_v62 = vpop.permute.xlu2 %255 }
  0x95   :  { %v289_v10 = vmul.f32 %v2000_v63, %v256_v62  ;;  %v290_v11 = vmul.f32 %v2002_v0, %v256_v62 }
  0x97   :  { %v165_v1 = vpop.permute.xlu1 %164  ;;  %v175_v4 = vpop.permute.xlu0 %174 }
  0x98   :  { %v206_v8 = vmul.f32 %v175_v4, %v1867_v3  ;;  %v207_v9 = vmul.f32 %v175_v4, %v1878_v5  ;;  %v202_v33 = vmul.f32 %v165_v1, %v1867_v3  ;;  %v203_v36 = vmul.f32 %v165_v1, %v1878_v5 }
  0x99   :  { %v140_v4 = vmul.f32 %v1998_v61, %v1952_v29 }
  0x9a   :  { %v222_v12 = vadd.f32 %v206_v8, %v141_v6  ;;  %v223_v13 = vadd.f32 %v207_v9, %v142_v7  ;;  %v218_v54 = vadd.f32 %v202_v33, %v137_v42  ;;  %v219_v55 = vadd.f32 %v203_v36, %v138_v43 }
  0x9b   :  { %v204_v8 = vmul.f32 %v1958_v35, %v1867_v3  ;;  %v205_v9 = vmul.f32 %v1958_v35, %v1878_v5  ;;  %v150_v42 = vmul.f32 %v1998_v61, %v1956_v31 }
  0x9c   :  { %v305_v14 = vadd.f32 %v289_v10, %v222_v12  ;;  %v306_v15 = vadd.f32 %v290_v11, %v223_v13  ;;  %v271_v18 = vpop.permute.xlu2 %270  ;;  %v143_v10 = vmul.f32 %v1996_v60, %v1966_v41  ;;  %v144_v11 = vmul.f32 %v1998_v61, %v1966_v41 }
  0x9d   :  { %v295_v25 = vmul.f32 %v2000_v63, %v271_v18  ;;  %v296_v26 = vmul.f32 %v2002_v0, %v271_v18  ;;  %v220_v29 = vadd.f32 %v204_v8, %v139_v28  ;;  %v217_v28 = vmul.f32 %v1972_v44, %v1878_v5 }
  0x9e   :  { %v321_v16 = vmax.f32 %v305_v14, 0.0  ;;  %v322_v17 = vmax.f32 %v306_v15, 0.0  ;;  %v221_v15 = vadd.f32 %v205_v9, %v140_v4  ;;  %v151_v4 = vmul.f32 %v1996_v60, %v1982_v51 }
  0x9f   :  { %v180_v19 = vpop.permute.xlu1 %179  ;;  %v190_v20 = vpop.permute.xlu0 %189 }
  0xa0   :  { %337 = vst [vmem:[#allocation2 + $0x50] sm:$0xff] %v321_v16  ;;  %v212_v23 = vmul.f32 %v190_v20, %v1867_v3  ;;  %v213_v24 = vmul.f32 %v190_v20, %v1878_v5  ;;  %v208_v62 = vmul.f32 %v180_v19, %v1867_v3  ;;  %v209_v1 = vmul.f32 %v180_v19, %v1878_v5 }
  0xa1   :  { %338 = vst [vmem:[#allocation2 + $0x68] sm:$0xff] %v322_v17 }
  0xa2   :  { %v228_v27 = vadd.f32 %v212_v23, %v147_v21  ;;  %v229_v32 = vadd.f32 %v213_v24, %v148_v22  ;;  %v224_v12 = vadd.f32 %v208_v62, %v143_v10  ;;  %v225_v13 = vadd.f32 %v209_v1, %v144_v11 }
  0xa3   :  { %v210_v23 = vmul.f32 %v1964_v40, %v1867_v3  ;;  %v211_v24 = vmul.f32 %v1964_v40, %v1878_v5  ;;  %v216_v1 = vmul.f32 %v1972_v44, %v1867_v3 }
  0xa4   :  { %v311_v37 = vadd.f32 %v295_v25, %v228_v27  ;;  %v312_v39 = vadd.f32 %v296_v26, %v229_v32  ;;  %v145_v27 = vmul.f32 %v1996_v60, %v1954_v30 }
  0xa6   :  { %v327_v45 = vmax.f32 %v311_v37, 0.0  ;;  %v328_v48 = vmax.f32 %v312_v39, 0.0  ;;  %v146_v37 = vmul.f32 %v1998_v61, %v1954_v30  ;;  %v149_v39 = vmul.f32 %v1996_v60, %v1956_v31 }
  0xa7   :  { %v195_v49 = vpop.permute.xlu1 %194  ;;  %v246_v50 = vpop.permute.xlu0 %245  ;;  %v226_v43 = vadd.f32 %v210_v23, %v145_v27 }
  0xa8   :  { %343 = vst [vmem:[#allocation2 + $0x10] sm:$0xff] %v327_v45  ;;  %v285_v56 = vmul.f32 %v2000_v63, %v246_v50  ;;  %v286_v57 = vmul.f32 %v2002_v0, %v246_v50  ;;  %v214_v25 = vmul.f32 %v195_v49, %v1867_v3  ;;  %v215_v26 = vmul.f32 %v195_v49, %v1878_v5 }
  0xa9   :  { %344 = vst [vmem:[#allocation2 + $0x38] sm:$0xff] %v328_v48  ;;  %v227_v45 = vadd.f32 %v211_v24, %v146_v37 }
  0xaa   :  { %v301_v58 = vadd.f32 %v285_v56, %v218_v54  ;;  %v302_v59 = vadd.f32 %v286_v57, %v219_v55  ;;  %v230_v48 = vadd.f32 %v214_v25, %v149_v39  ;;  %v231_v49 = vadd.f32 %v215_v26, %v150_v42 }
  0xac   :  { %v317_v6 = vmax.f32 %v301_v58, 0.0  ;;  %v318_v7 = vmax.f32 %v302_v59, 0.0 }
  0xae   :  { %333 = vst [vmem:[#allocation2 + $0x30] sm:$0xff] %v317_v6  ;;  %v152_v6 = vmul.f32 %v1998_v61, %v1982_v51 }
  0xaf   :  { %334 = vst [vmem:[#allocation2] sm:$0xff] %v318_v7  ;;  %v251_v14 = vpop.permute.xlu1 %250  ;;  %v261_v16 = vpop.permute.xlu0 %260 }
  0xb0   :  { %v287_v17 = vmul.f32 %v2000_v63, %v251_v14  ;;  %v288_v18 = vmul.f32 %v2002_v0, %v251_v14  ;;  %v291_v35 = vmul.f32 %v2000_v63, %v261_v16  ;;  %v292_v19 = vmul.f32 %v2002_v0, %v261_v16 }
  0xb2   :  { %v303_v20 = vadd.f32 %v287_v17, %v220_v29  ;;  %v304_v21 = vadd.f32 %v288_v18, %v221_v15  ;;  %v307_v22 = vadd.f32 %v291_v35, %v224_v12  ;;  %v308_v41 = vadd.f32 %v292_v19, %v225_v13 }
  0xb3   :  { %v232_v12 = vadd.f32 %v216_v1, %v151_v4  ;;  %v233_v13 = vadd.f32 %v217_v28, %v152_v6 }
  0xb4   :  { %v319_v32 = vmax.f32 %v303_v20, 0.0  ;;  %v320_v33 = vmax.f32 %v304_v21, 0.0  ;;  %v323_v36 = vmax.f32 %v307_v22, 0.0  ;;  %v324_v40 = vmax.f32 %v308_v41, 0.0 }
  0xb6   :  { %335 = vst [vmem:[#allocation2 + $0x58] sm:$0xff] %v319_v32 }
  0xb7   :  { %336 = vst [vmem:[#allocation2 + $0x18] sm:$0xff] %v320_v33  ;;  %v266_v50 = vpop.permute.xlu1 %265  ;;  %v276_v54 = vpop.permute.xlu0 %275 }
  0xb8   :  { %339 = vst [vmem:[#allocation2 + $0x8] sm:$0xff] %v323_v36  ;;  %v293_v55 = vmul.f32 %v2000_v63, %v266_v50  ;;  %v294_v30 = vmul.f32 %v2002_v0, %v266_v50  ;;  %v297_v56 = vmul.f32 %v2000_v63, %v276_v54  ;;  %v298_v57 = vmul.f32 %v2002_v0, %v276_v54 }
  0xb9   :  { %340 = vst [vmem:[#allocation2 + $0x48] sm:$0xff] %v324_v40 }
  0xba   :  { %v309_v31 = vadd.f32 %v293_v55, %v226_v43  ;;  %v310_v58 = vadd.f32 %v294_v30, %v227_v45  ;;  %v313_v59 = vadd.f32 %v297_v56, %v230_v48  ;;  %v314_v62 = vadd.f32 %v298_v57, %v231_v49 }
  0xbc   :  { %v325_v7 = vmax.f32 %v309_v31, 0.0  ;;  %v326_v8 = vmax.f32 %v310_v58, 0.0  ;;  %v329_v9 = vmax.f32 %v313_v59, 0.0  ;;  %v330_v10 = vmax.f32 %v314_v62, 0.0 }
  0xbe   :  { %341 = vst [vmem:[#allocation2 + $0x40] sm:$0xff] %v325_v7 }
  0xbf   :  { %342 = vst [vmem:[#allocation2 + $0x20] sm:$0xff] %v326_v8  ;;  %v281_v11 = vpop.permute.xlu1 %280 }
  0xc0   :  { %345 = vst [vmem:[#allocation2 + $0x60] sm:$0xff] %v329_v9  ;;  %v299_v3 = vmul.f32 %v2000_v63, %v281_v11  ;;  %v300_v5 = vmul.f32 %v2002_v0, %v281_v11 }
  0xc1   :  { %346 = vst [vmem:[#allocation2 + $0x70] sm:$0xff] %v330_v10 }
  0xc2   :  { %v315_v44 = vadd.f32 %v299_v3, %v232_v12  ;;  %v316_v60 = vadd.f32 %v300_v5, %v233_v13 }
  0xc4   :  { %v331_v14 = vmax.f32 %v315_v44, 0.0  ;;  %v332_v29 = vmax.f32 %v316_v60, 0.0 }
  0xc6   :  { %347 = vst [vmem:[#allocation2 + $0x78] sm:$0xff] %v331_v14 }
  0xc7   :  { %348 = vst [vmem:[#allocation2 + $0x28] sm:$0xff] %v332_v29 }
  0xc8 LB: > { %s1821_s0 = smov 127   ;;  %s1822_s27 = smov 1   ;;  %v367_v63 = vld [vmem:[#allocation2 + $0x60] sm:$0xff]  ;;  %v368_v0 = vld [vmem:[#allocation2 + $0x70] sm:$0xff]  ;;  %v366_v15 = vld [vmem:[#allocation2 + $0x38] sm:$0xff]  ;;  %vm614_vm6 = vcmask 523264   ;;  %s1815_s1 = sphi %s2070_s1, %s354_s1  }
  0xc9   : > { %383 = vrot.lane.b32.xlu2 %v367_v63, %s1822_s27  ;;  %v365_v16 = vld [vmem:[#allocation2 + $0x10] sm:$0xff]  ;;  %v364_v17 = vld [vmem:[#allocation2 + $0x20] sm:$0xff]  ;;  %v361_v35 = vld [vmem:[#allocation2 + $0x8] sm:$0xff]  ;;  %s1741_s28 = sshll.u32 %s1815_s1, 7  ;;  %s1740_s8 = sshll.u32 %s1815_s1, 6 }
  0xca   : > { %v363_v18 = vld [vmem:[#allocation2 + $0x40] sm:$0xff]  ;;  %v362_v19 = vld [vmem:[#allocation2 + $0x48] sm:$0xff]  ;;  %v359_v21 = vld [vmem:[#allocation2 + $0x50] sm:$0xff]  ;;  %s2189_s7 = scalar_lea.vmem %s2816_s2, %s1741_s28  ;;  %s2317_s11 = scalar_lea.vmem %s2818_s4, %s1740_s8 }
  0xcb   : > { %v360_v20 = vld [vmem:[#allocation2 + $0x68] sm:$0xff]  ;;  %v358_v22 = vld [vmem:[#allocation2 + $0x18] sm:$0xff]  ;;  %v355_v23 = vld [vmem:[#allocation2 + $0x30] sm:$0xff]  ;;  %s2348_s14 = scalar_lea.vmem %s2817_s3, %s1740_s8  ;;  %s354_s1 = sadd.s32 1, %s1815_s1  }
  0xcc   : > { %v357_v41 = vld [vmem:[#allocation2 + $0x58] sm:$0xff]  ;;  %v356_v24 = vld [vmem:[#allocation2] sm:$0xff]  ;;  %p351_p0 = scmp.ge.s32.totalorder %s354_s1, 15  }
  0xcd   : > { %v369_v51 = vld [vmem:[#allocation2 + $0x78] sm:$0xff]  ;;  %s1682_s8 = sshll.u32 (%p351_p0), %s2820_s6, 4  ;;  %s1683_s8 = int_to_ptr.hbm [resolvable:$true] %s1682_s8 }
  0xce   : > { %449 = vrot.lane.b32.xlu1 %v369_v51, %s1821_s0  ;;  %385 = vrot.lane.b32.xlu0 %v369_v51, %s1822_s27  ;;  %v370_v61 = vld [vmem:[#allocation2 + $0x28] sm:$0xff] }
  0xcf   : > { %639 = vmatpush.msra.mxu0 %v369_v51  ;;  %721 = vmatpush.msra.mxu2 %v370_v61 }
  0xd1   : > { %640 = vmatpush.msra.mxu0 %v367_v63  ;;  %722 = vmatpush.msra.mxu2 %v368_v0 }
  0xd2   : > { %399 = vrot.lane.b32.xlu2 %v368_v0, %s1822_s27 }
  0xd3   : > { %641 = vmatpush.msra.mxu0 %v365_v16  ;;  %723 = vmatpush.msra.mxu2 %v366_v15 }
  0xd5   : > { %642 = vmatpush.msra.mxu0 %v363_v18  ;;  %724 = vmatpush.msra.mxu2 %v364_v17 }
  0xd6   : > { %465 = vrot.lane.b32.xlu1 %v370_v61, %s1821_s0  ;;  %401 = vrot.lane.b32.xlu0 %v370_v61, %s1822_s27 }
  0xd7   : > { %643 = vmatpush.msra.mxu0 %v361_v35  ;;  %725 = vmatpush.msra.mxu2 %v362_v19 }
  0xd9   : > { %726 = vmatpush.msra.mxu2 %v360_v20  ;;  %644 = vmatpush.msra.mxu0 %v359_v21 }
  0xda   : > { %381 = vrot.lane.b32.xlu2 %v365_v16, %s1822_s27 }
  0xdb   : > { %727 = vmatpush.msra.mxu2 %v358_v22  ;;  %645 = vmatpush.msra.mxu0 %v357_v41 }
  0xdd   : > { %646 = vmatpush.msra.mxu0 %v355_v23  ;;  %728 = vmatpush.msra.mxu2 %v356_v24 }
  0xde   : > { %463 = vrot.lane.b32.xlu1 %v368_v0, %s1821_s0  ;;  %447 = vrot.lane.b32.xlu0 %v367_v63, %s1821_s0 }
  0xe2   : > { %461 = vrot.lane.b32.xlu2 %v366_v15, %s1821_s0 }
  0xe6   : > { %397 = vrot.lane.b32.xlu0 %v366_v15, %s1822_s27  ;;  %445 = vrot.lane.b32.xlu1 %v365_v16, %s1821_s0 }
  0xea   : > { %443 = vrot.lane.b32.xlu2 %v363_v18, %s1821_s0 }
  0xee   : > { %395 = vrot.lane.b32.xlu1 %v364_v17, %s1822_s27  ;;  %379 = vrot.lane.b32.xlu0 %v363_v18, %s1822_s27 }
  0xf2   : > { %393 = vrot.lane.b32.xlu2 %v362_v19, %s1822_s27 }
  0xf6   : > { %459 = vrot.lane.b32.xlu0 %v364_v17, %s1821_s0  ;;  %377 = vrot.lane.b32.xlu1 %v361_v35, %s1822_s27 }
  0xfa   : > { %375 = vrot.lane.b32.xlu2 %v359_v21, %s1822_s27 }
  0xfe   : > { %441 = vrot.lane.b32.xlu0 %v361_v35, %s1821_s0  ;;  %457 = vrot.lane.b32.xlu1 %v362_v19, %s1821_s0 }
 0x102   : > { %455 = vrot.lane.b32.xlu2 %v360_v20, %s1821_s0 }
 0x106   : > { %391 = vrot.lane.b32.xlu0 %v360_v20, %s1822_s27  ;;  %439 = vrot.lane.b32.xlu1 %v359_v21, %s1821_s0 }
 0x10a   : > { %437 = vrot.lane.b32.xlu2 %v357_v41, %s1821_s0 }
 0x10e   : > { %389 = vrot.lane.b32.xlu1 %v358_v22, %s1822_s27  ;;  %373 = vrot.lane.b32.xlu0 %v357_v41, %s1822_s27 }
 0x112   : > { %387 = vrot.lane.b32.xlu2 %v356_v24, %s1822_s27 }
 0x116   : > { %453 = vrot.lane.b32.xlu0 %v358_v22, %s1821_s0  ;;  %371 = vrot.lane.b32.xlu1 %v355_v23, %s1822_s27 }
 0x11e   : > { %435 = vrot.lane.b32.xlu0 %v355_v23, %s1821_s0  ;;  %451 = vrot.lane.b32.xlu1 %v356_v24, %s1821_s0 }
 0x123   : > { %v384_v25 = vpop.permute.xlu2 %383 }
 0x12c   : > { %v400_v26 = vpop.permute.xlu2 %399 }
 0x12d   : > { %v409_v27 = vsel %vm73_vm2, %v384_v25, %v400_v26  ;;  %v417_v32 = vsel %vm73_vm2, %v400_v26, %v384_v25 }
 0x12e   : > { %v431_v33 = vmul.f32 %v1974_v46, %v417_v32  ;;  %v432_v36 = vmul.f32 %v1976_v47, %v409_v27 }
 0x134   : > { %v382_v37 = vpop.permute.xlu2 %381 }
 0x13c   : > { %v462_v54 = vpop.permute.xlu2 %461 }
 0x140   : > { %v450_v39 = vpop.permute.xlu1 %449  ;;  %v386_v42 = vpop.permute.xlu0 %385 }
 0x144   : > { %v444_v4 = vpop.permute.xlu2 %443 }
 0x148   : > { %v466_v40 = vpop.permute.xlu1 %465  ;;  %v402_v43 = vpop.permute.xlu0 %401 }
 0x149   : > { %v474_v45 = vsel %vm82_vm5, %v450_v39, %v466_v40  ;;  %v482_v48 = vsel %vm82_vm5, %v466_v40, %v450_v39  ;;  %v410_v49 = vsel %vm73_vm2, %v386_v42, %v402_v43  ;;  %v418_v50 = vsel %vm73_vm2, %v402_v43, %v386_v42 }
 0x14a   : > { %v497_v55 = vmul.f32 %v1984_v52, %v474_v45  ;;  %v498_v30 = vmul.f32 %v1986_v53, %v482_v48  ;;  %v433_v56 = vmul.f32 %v1974_v46, %v418_v50  ;;  %v434_v57 = vmul.f32 %v1976_v47, %v410_v49 }
 0x14c   : > { %647 = vmatpush.msra.mxu0 %v433_v56  ;;  %688 = vmatpush.msra.mxu1 %v497_v55  ;;  %v394_v44 = vpop.permute.xlu2 %393 }
 0x14d   : > { %729 = vmatpush.msra.mxu2 %v434_v57  ;;  %770 = vmatpush.msra.mxu3 %v498_v30 }
 0x14e   : > { %648 = vmatpush.msra.mxu0 %v431_v33 }
 0x14f   : > { %730 = vmatpush.msra.mxu2 %v432_v36 }
 0x150   : > { %v464_v31 = vpop.permute.xlu1 %463  ;;  %v448_v58 = vpop.permute.xlu0 %447 }
 0x151   : > { %v473_v59 = vsel %vm82_vm5, %v448_v58, %v464_v31  ;;  %v481_v62 = vsel %vm82_vm5, %v464_v31, %v448_v58 }
 0x152   : > { %v495_v1 = vmul.f32 %v1984_v52, %v473_v59  ;;  %v496_v28 = vmul.f32 %v1986_v53, %v481_v62 }
 0x154   : > { %689 = vmatpush.msra.mxu1 %v495_v1  ;;  %771 = vmatpush.msra.mxu3 %v496_v28  ;;  %v376_v0 = vpop.permute.xlu2 %375 }
 0x158   : > { %v398_v6 = vpop.permute.xlu0 %397  ;;  %v446_v7 = vpop.permute.xlu1 %445 }
 0x159   : > { %v408_v8 = vsel %vm73_vm2, %v382_v37, %v398_v6  ;;  %v416_v9 = vsel %vm73_vm2, %v398_v6, %v382_v37  ;;  %v472_v10 = vsel %vm82_vm5, %v446_v7, %v462_v54  ;;  %v480_v11 = vsel %vm82_vm5, %v462_v54, %v446_v7 }
 0x15a   : > { %v429_v12 = vmul.f32 %v1974_v46, %v416_v9  ;;  %v430_v13 = vmul.f32 %v1976_v47, %v408_v8  ;;  %v493_v3 = vmul.f32 %v1984_v52, %v472_v10  ;;  %v494_v5 = vmul.f32 %v1986_v53, %v480_v11 }
 0x15c   : > { %649 = vmatpush.msra.mxu0 %v429_v12  ;;  %690 = vmatpush.msra.mxu1 %v493_v3  ;;  %v456_v33 = vpop.permute.xlu2 %455  ;;  %v550_v12 = vld [vmem:[%s2189_s7] sm:$0xff] }
 0x15d   : > { %731 = vmatpush.msra.mxu2 %v430_v13  ;;  %772 = vmatpush.msra.mxu3 %v494_v5 }
 0x160   : > { %v396_v60 = vpop.permute.xlu1 %395  ;;  %v380_v14 = vpop.permute.xlu0 %379 }
 0x161   : > { %v407_v29 = vsel %vm73_vm2, %v380_v14, %v396_v60  ;;  %v415_v51 = vsel %vm73_vm2, %v396_v60, %v380_v14 }
 0x162   : > { %v427_v61 = vmul.f32 %v1974_v46, %v415_v51  ;;  %v428_v63 = vmul.f32 %v1976_v47, %v407_v29  ;;  %v551_v29 = vld [vmem:[%s2189_s7 + $0x8] sm:$0xff]  ;;  %v552_v51 = vld [vmem:[%s2189_s7 + $0x10] sm:$0xff] }
 0x164   : > { %650 = vmatpush.msra.mxu0 %v427_v61  ;;  %732 = vmatpush.msra.mxu2 %v428_v63  ;;  %v438_v54 = vpop.permute.xlu2 %437  ;;  %v553_v61 = vld [vmem:[%s2189_s7 + $0x18] sm:$0xff]  ;;  %v554_v63 = vld [vmem:[%s2189_s7 + $0x20] sm:$0xff] }
 0x168   : > { %v460_v15 = vpop.permute.xlu0 %459  ;;  %v378_v16 = vpop.permute.xlu1 %377 }
 0x169   : > { %v471_v17 = vsel %vm82_vm5, %v444_v4, %v460_v15  ;;  %v479_v18 = vsel %vm82_vm5, %v460_v15, %v444_v4  ;;  %v406_v35 = vsel %vm73_vm2, %v378_v16, %v394_v44  ;;  %v414_v19 = vsel %vm73_vm2, %v394_v44, %v378_v16  ;;  %v556_v15 = vld [vmem:[%s2189_s7 + $0x30] sm:$0xff]  ;;  %v557_v16 = vld [vmem:[%s2189_s7 + $0x38] sm:$0xff] }
 0x16a   : > { %v491_v20 = vmul.f32 %v1984_v52, %v471_v17  ;;  %v492_v21 = vmul.f32 %v1986_v53, %v479_v18  ;;  %v425_v22 = vmul.f32 %v1974_v46, %v414_v19  ;;  %v426_v41 = vmul.f32 %v1976_v47, %v406_v35  ;;  %v558_v17 = vld [vmem:[%s2189_s7 + $0x40] sm:$0xff]  ;;  %v559_v18 = vld [vmem:[%s2189_s7 + $0x48] sm:$0xff]  ;;  %v560_v35 = vld [vmem:[%s2189_s7 + $0x50] sm:$0xff] }
 0x16b   : > { %v561_v19 = vld [vmem:[%s2189_s7 + $0x58] sm:$0xff] }
 0x16c   : > { %651 = vmatpush.msra.mxu0 %v425_v22  ;;  %691 = vmatpush.msra.mxu1 %v491_v20  ;;  %v388_v59 = vpop.permute.xlu2 %387  ;;  %v562_v20 = vld [vmem:[%s2189_s7 + $0x60] sm:$0xff]  ;;  %v564_v22 = vld [vmem:[%s2189_s7 + $0x70] sm:$0xff] }
 0x16d   : > { %733 = vmatpush.msra.mxu2 %v426_v41  ;;  %773 = vmatpush.msra.mxu3 %v492_v21  ;;  %v563_v21 = vld [vmem:[%s2189_s7 + $0x68] sm:$0xff]  ;;  %v565_v41 = vld [vmem:[%s2189_s7 + $0x78] sm:$0xff] }
 0x170   : > { %v442_v23 = vpop.permute.xlu0 %441  ;;  %v458_v24 = vpop.permute.xlu1 %457 }
 0x171   : > { %v470_v25 = vsel %vm82_vm5, %v442_v23, %v458_v24  ;;  %v478_v26 = vsel %vm82_vm5, %v458_v24, %v442_v23 }
 0x172   : > { %v489_v27 = vmul.f32 %v1984_v52, %v470_v25  ;;  %v490_v32 = vmul.f32 %v1986_v53, %v478_v26 }
 0x174   : > { %692 = vmatpush.msra.mxu1 %v489_v27  ;;  %774 = vmatpush.msra.mxu3 %v490_v32 }
 0x178   : > { %v392_v36 = vpop.permute.xlu0 %391  ;;  %v440_v37 = vpop.permute.xlu1 %439 }
 0x179   : > { %v405_v39 = vsel %vm73_vm2, %v376_v0, %v392_v36  ;;  %v413_v42 = vsel %vm73_vm2, %v392_v36, %v376_v0  ;;  %v469_v40 = vsel %vm82_vm5, %v440_v37, %v456_v33  ;;  %v477_v43 = vsel %vm82_vm5, %v456_v33, %v440_v37  ;;  %v555_v0 = vld [vmem:[%s2189_s7 + $0x28] sm:$0xff] }
 0x17a   : > { %v423_v45 = vmul.f32 %v1974_v46, %v413_v42  ;;  %v424_v48 = vmul.f32 %v1976_v47, %v405_v39  ;;  %v487_v49 = vmul.f32 %v1984_v52, %v469_v40  ;;  %v488_v50 = vmul.f32 %v1986_v53, %v477_v43 }
 0x17c   : > { %652 = vmatpush.msra.mxu0 %v423_v45  ;;  %693 = vmatpush.msra.mxu1 %v487_v49 }
 0x17d   : > { %734 = vmatpush.msra.mxu2 %v424_v48  ;;  %775 = vmatpush.msra.mxu3 %v488_v50 }
 0x180   : > { %v390_v55 = vpop.permute.xlu1 %389  ;;  %v374_v30 = vpop.permute.xlu0 %373 }
 0x181   : > { %v404_v56 = vsel %vm73_vm2, %v374_v30, %v390_v55  ;;  %v412_v57 = vsel %vm73_vm2, %v390_v55, %v374_v30 }
 0x182   : > { %v421_v31 = vmul.f32 %v1974_v46, %v412_v57  ;;  %v422_v58 = vmul.f32 %v1976_v47, %v404_v56 }
 0x184   : > { %653 = vmatpush.msra.mxu0 %v421_v31  ;;  %735 = vmatpush.msra.mxu2 %v422_v58 }
 0x188   : > { %v454_v62 = vpop.permute.xlu0 %453  ;;  %v372_v1 = vpop.permute.xlu1 %371 }
 0x189   : > { %v468_v28 = vsel %vm82_vm5, %v438_v54, %v454_v62  ;;  %v476_v4 = vsel %vm82_vm5, %v454_v62, %v438_v54  ;;  %v403_v6 = vsel %vm73_vm2, %v372_v1, %v388_v59  ;;  %v411_v7 = vsel %vm73_vm2, %v388_v59, %v372_v1 }
 0x18a   : > { %v485_v8 = vmul.f32 %v1984_v52, %v468_v28  ;;  %v486_v9 = vmul.f32 %v1986_v53, %v476_v4  ;;  %v419_v10 = vmul.f32 %v1974_v46, %v411_v7  ;;  %v420_v11 = vmul.f32 %v1976_v47, %v403_v6 }
 0x18c   : > { %654 = vmatpush.msra.mxu0 %v419_v10  ;;  %694 = vmatpush.msra.mxu1 %v485_v8 }
 0x18d   : > { %736 = vmatpush.msra.mxu2 %v420_v11  ;;  %776 = vmatpush.msra.mxu3 %v486_v9 }
 0x18e   : > { %737 = vmatmul.f32.vlgmr.msra.gmra.mxu2 %v550_v12  ;;  %655 = vmatmul.f32.vlgmr.msra.gmra.mxu0 %v550_v12 }
 0x190   : > { %v436_v13 = vpop.permute.xlu0 %435  ;;  %v452_v3 = vpop.permute.xlu1 %451 }
 0x191   : > { %v467_v5 = vsel %vm82_vm5, %v436_v13, %v452_v3  ;;  %v475_v44 = vsel %vm82_vm5, %v452_v3, %v436_v13  ;;  %v1823_v13 = vmov 0  }
 0x192   : > { %v483_v60 = vmul.f32 %v1984_v52, %v467_v5  ;;  %v484_v14 = vmul.f32 %v1986_v53, %v475_v44  ;;  %1763 = vset.pattern.permute.xlu2 %v1823_v13  ;;  %1762 = vset.pattern.permute.xlu1 %v1823_v13 }
 0x193   : > { %1761 = vset.pattern.permute.xlu0 %v1823_v13  ;;  %v1081_v13 = vld [vmem:[%s2317_s11 + $0x18] sm:$0xff] }
 0x194   : > { %695 = vmatpush.msra.mxu1 %v483_v60  ;;  %777 = vmatpush.msra.mxu3 %v484_v14 }
 0x195   : > { %1732 = vmatmul.msk.f32.vlgmr.msra.gmra.mxu3 %vm614_vm6, %v551_v29  ;;  %1724 = vmatmul.msk.f32.vlgmr.msra.gmra.mxu1 %vm614_vm6, %v551_v29 }
 0x196   : > { %740 = vmatmul.f32.gmra.mxu2 %v552_v51  ;;  %658 = vmatmul.f32.gmra.mxu0 %v552_v51 }
 0x19d   : > { %1733 = vmatmul.msk.f32.gmra.mxu3 %vm614_vm6, %v553_v61  ;;  %1725 = vmatmul.msk.f32.gmra.mxu1 %vm614_vm6, %v553_v61 }
 0x19e   : > { %743 = vmatmul.f32.gmra.mxu2 %v554_v63  ;;  %661 = vmatmul.f32.gmra.mxu0 %v554_v63 }
 0x1a5   : > { %1734 = vmatmul.msk.f32.gmra.mxu3 %vm614_vm6, %v555_v0  ;;  %1726 = vmatmul.msk.f32.gmra.mxu1 %vm614_vm6, %v555_v0 }
 0x1a6   : > { %746 = vmatmul.f32.gmra.mxu2 %v556_v15  ;;  %664 = vmatmul.f32.gmra.mxu0 %v556_v15 }
 0x1ad   : > { %1735 = vmatmul.msk.f32.gmra.mxu3 %vm614_vm6, %v557_v16  ;;  %1727 = vmatmul.msk.f32.gmra.mxu1 %vm614_vm6, %v557_v16 }
 0x1ae   : > { %749 = vmatmul.f32.gmra.mxu2 %v558_v17  ;;  %667 = vmatmul.f32.gmra.mxu0 %v558_v17 }
 0x1b5   : > { %1736 = vmatmul.msk.f32.gmra.mxu3 %vm614_vm6, %v559_v18  ;;  %1728 = vmatmul.msk.f32.gmra.mxu1 %vm614_vm6, %v559_v18 }
 0x1b6   : > { %752 = vmatmul.f32.gmra.mxu2 %v560_v35  ;;  %670 = vmatmul.f32.gmra.mxu0 %v560_v35 }
 0x1bd   : > { %1737 = vmatmul.msk.f32.gmra.mxu3 %vm614_vm6, %v561_v19  ;;  %1729 = vmatmul.msk.f32.gmra.mxu1 %vm614_vm6, %v561_v19 }
 0x1be   : > { %755 = vmatmul.f32.gmra.mxu2 %v562_v20  ;;  %673 = vmatmul.f32.gmra.mxu0 %v562_v20 }
 0x1c5   : > { %1738 = vmatmul.msk.f32.gmra.mxu3 %vm614_vm6, %v563_v21  ;;  %1730 = vmatmul.msk.f32.gmra.mxu1 %vm614_vm6, %v563_v21 }
 0x1c6   : > { %758 = vmatmul.f32.gmra.mxu2 %v564_v22  ;;  %676 = vmatmul.f32.gmra.mxu0 %v564_v22 }
 0x1cd   : > { %1739 = vmatmul.msk.f32.gmra.mxu3 %vm614_vm6, %v565_v41  ;;  %1731 = vmatmul.msk.f32.gmra.mxu1 %vm614_vm6, %v565_v41 }
 0x20b   : > { %v656_v23 = vpop.f32.mrf.mxu0 }
 0x211   : > { %v738_v24 = vpop.f32.mrf.mxu2 }
 0x212   : > { %v697_v25 = vpop.f32.mrf.mxu1 }
 0x213   : > { %v659_v26 = vpop.f32.mrf.mxu0  ;;  %v2241_v27 = vadd.f32 %v697_v25, %v656_v23 }
 0x215   : > { %v835_v36 = vmul.f32 %v2241_v27, %v2241_v27 }
 0x218   : > { %v779_v32 = vpop.f32.mrf.mxu3 }
 0x219   : > { %v2243_v33 = vadd.f32 %v779_v32, %v738_v24  ;;  %v741_v37 = vpop.f32.mrf.mxu2 }
 0x21a   : > { %v700_v39 = vpop.f32.mrf.mxu1 }
 0x21b   : > { %v803_v42 = vadd.f32 %v2243_v33, %v2241_v27  ;;  %v836_v40 = vmul.f32 %v2243_v33, %v2243_v33  ;;  %v662_v43 = vpop.f32.mrf.mxu0  ;;  %v2251_v48 = vadd.f32 %v700_v39, %v659_v26 }
 0x21d   : > { %804 = vadd.xlane.f32.xlu2 %v803_v42  ;;  %v851_v45 = vadd.f32 %v836_v40, %v835_v36  ;;  %v837_v54 = vmul.f32 %v2251_v48, %v2251_v48 }
 0x21f   : > { %852 = vadd.xlane.f32.xlu0 %v851_v45 }
 0x220   : > { %v782_v49 = vpop.f32.mrf.mxu3 }
 0x221   : > { %v2253_v50 = vadd.f32 %v782_v49, %v741_v37  ;;  %v744_v55 = vpop.f32.mrf.mxu2 }
 0x222   : > { %v703_v30 = vpop.f32.mrf.mxu1 }
 0x223   : > { %v838_v56 = vmul.f32 %v2253_v50, %v2253_v50  ;;  %v665_v57 = vpop.f32.mrf.mxu0  ;;  %v806_v58 = vadd.f32 %v2253_v50, %v2251_v48  ;;  %v2261_v59 = vadd.f32 %v703_v30, %v662_v43  ;;  %v1079_v30 = vld [vmem:[%s2317_s11 + $0x8] sm:$0xff] }
 0x225   : > { %v854_v31 = vadd.f32 %v838_v56, %v837_v54  ;;  %v839_v28 = vmul.f32 %v2261_v59, %v2261_v59  ;;  %v1078_v56 = vld [vmem:[%s2317_s11] sm:$0xff] }
 0x227   : > { %855 = vadd.xlane.f32.xlu1 %v854_v31  ;;  %807 = vadd.xlane.f32.xlu0 %v806_v58 }
 0x228   : > { %v785_v62 = vpop.f32.mrf.mxu3 }
 0x229   : > { %v2263_v1 = vadd.f32 %v785_v62, %v744_v55  ;;  %v747_v4 = vpop.f32.mrf.mxu2  ;;  %v1080_v55 = vld [vmem:[%s2317_s11 + $0x10] sm:$0xff] }
 0x22a   : > { %v706_v6 = vpop.f32.mrf.mxu1 }
 0x22b   : > { %v840_v7 = vmul.f32 %v2263_v1, %v2263_v1  ;;  %v809_v9 = vadd.f32 %v2263_v1, %v2261_v59  ;;  %v2271_v10 = vadd.f32 %v706_v6, %v665_v57  ;;  %v668_v11 = vpop.f32.mrf.mxu0 }
 0x22d   : > { %v857_v8 = vadd.f32 %v840_v7, %v839_v28  ;;  %v841_v5 = vmul.f32 %v2271_v10, %v2271_v10 }
 0x22f   : > { %858 = vadd.xlane.f32.xlu2 %v857_v8  ;;  %810 = vadd.xlane.f32.xlu1 %v809_v9 }
 0x230   : > { %v788_v12 = vpop.f32.mrf.mxu3 }
 0x231   : > { %v2273_v3 = vadd.f32 %v788_v12, %v747_v4  ;;  %v750_v60 = vpop.f32.mrf.mxu2 }
 0x232   : > { %v709_v44 = vpop.f32.mrf.mxu1 }
 0x233   : > { %v842_v14 = vmul.f32 %v2273_v3, %v2273_v3  ;;  %v812_v51 = vadd.f32 %v2273_v3, %v2271_v10  ;;  %v2281_v61 = vadd.f32 %v709_v44, %v668_v11  ;;  %v671_v0 = vpop.f32.mrf.mxu0 }
 0x235   : > { %v860_v29 = vadd.f32 %v842_v14, %v841_v5  ;;  %v843_v16 = vmul.f32 %v2281_v61, %v2281_v61 }
 0x237   : > { %861 = vadd.xlane.f32.xlu0 %v860_v29  ;;  %813 = vadd.xlane.f32.xlu2 %v812_v51 }
 0x238   : > { %v791_v63 = vpop.f32.mrf.mxu3 }
 0x239   : > { %v2283_v15 = vadd.f32 %v791_v63, %v750_v60  ;;  %v753_v35 = vpop.f32.mrf.mxu2 }
 0x23a   : > { %v712_v17 = vpop.f32.mrf.mxu1 }
 0x23b   : > { %v844_v18 = vmul.f32 %v2283_v15, %v2283_v15  ;;  %v815_v20 = vadd.f32 %v2283_v15, %v2281_v61  ;;  %v2291_v21 = vadd.f32 %v712_v17, %v671_v0  ;;  %v674_v24 = vpop.f32.mrf.mxu0 }
 0x23d   : > { %v863_v19 = vadd.f32 %v844_v18, %v843_v16  ;;  %v845_v23 = vmul.f32 %v2291_v21, %v2291_v21 }
 0x23f   : > { %864 = vadd.xlane.f32.xlu1 %v863_v19  ;;  %816 = vadd.xlane.f32.xlu2 %v815_v20 }
 0x240   : > { %v794_v22 = vpop.f32.mrf.mxu3 }
 0x241   : > { %v2293_v41 = vadd.f32 %v794_v22, %v753_v35  ;;  %v756_v39 = vpop.f32.mrf.mxu2 }
 0x242   : > { %v715_v25 = vpop.f32.mrf.mxu1 }
 0x243   : > { %v818_v26 = vadd.f32 %v2293_v41, %v2291_v21  ;;  %v846_v32 = vmul.f32 %v2293_v41, %v2293_v41  ;;  %v2301_v37 = vadd.f32 %v715_v25, %v674_v24  ;;  %v677_v57 = vpop.f32.mrf.mxu0 }
 0x245   : > { %819 = vadd.xlane.f32.xlu0 %v818_v26  ;;  %v866_v36 = vadd.f32 %v846_v32, %v845_v23  ;;  %v847_v43 = vmul.f32 %v2301_v37, %v2301_v37 }
 0x247   : > { %867 = vadd.xlane.f32.xlu2 %v866_v36 }
 0x248   : > { %v797_v42 = vpop.f32.mrf.mxu3 }
 0x249   : > { %v2303_v40 = vadd.f32 %v797_v42, %v756_v39  ;;  %v759_v31 = vpop.f32.mrf.mxu2  ;;  %v1082_v42 = vld [vmem:[%s2317_s11 + $0x20] sm:$0xff] }
 0x24a   : > { %v718_v58 = vpop.f32.mrf.mxu1 }
 0x24b   : > { %v821_v45 = vadd.f32 %v2303_v40, %v2301_v37  ;;  %v848_v49 = vmul.f32 %v2303_v40, %v2303_v40  ;;  %v2322_v28 = vadd.f32 %v718_v58, %v677_v57 }
 0x24d   : > { %822 = vadd.xlane.f32.xlu1 %v821_v45  ;;  %v869_v54 = vadd.f32 %v848_v49, %v847_v43  ;;  %v849_v7 = vmul.f32 %v2322_v28, %v2322_v28  ;;  %v989_v49 = vld [vmem:[%s2348_s14] sm:$0xff] }
 0x24f   : > { %870 = vadd.xlane.f32.xlu0 %v869_v54 }
 0x250   : > { %v800_v62 = vpop.f32.mrf.mxu3 }
 0x251   : > { %v2324_v4 = vadd.f32 %v800_v62, %v759_v31 }
 0x253   : > { %v824_v6 = vadd.f32 %v2324_v4, %v2322_v28  ;;  %v850_v8 = vmul.f32 %v2324_v4, %v2324_v4 }
 0x255   : > { %v872_v9 = vadd.f32 %v850_v8, %v849_v7 }
 0x25f   : > { %1098 = vperm.xlu2 %1763, %v1080_v55  }
 0x263   : > { %1088 = vperm.xlu0 %1761, %v1078_v56  }
 0x266   : > { %1093 = vperm.xlu1 %1762, %v1079_v30  }
 0x26b   : > { %1103 = vperm.xlu0 %1761, %v1081_v13  }
 0x288   : > { %825 = vadd.xlane.f32.xlu2 %v824_v6 }
 0x290   : > { %v805_v11 = vpop.xlane.xlu2 %804  ;;  %873 = vadd.xlane.f32.xlu1 %v872_v9 }
 0x291   : > { %v2332_v12 = vmul.f32 0.00390625, %v805_v11 }
 0x292   : > { %v853_v5 = vpop.xlane.xlu0 %852 }
 0x293   : > { %v875_v44 = vmul.f32 0.00390625, %v853_v5  ;;  %v883_v60 = vmul.f32 %v2332_v12, %v2332_v12 }
 0x295   : > { %v891_v14 = vsub.f32 %v875_v44, %v883_v60 }
 0x297   : > { %v899_v29 = vadd.f32 1e-05, %v891_v14 }
 0x299   : > { %1764 = vrsqrt.f32 %v899_v29  ;;  %vm913_vm8 = vweird.f32 %v899_v29 }
 0x29a   : > { %v856_v51 = vpop.xlane.xlu1 %855  ;;  %v808_v63 = vpop.xlane.xlu0 %807 }
 0x29b   : > { %v2337_v0 = vmul.f32 0.00390625, %v808_v63  ;;  %v876_v16 = vmul.f32 0.00390625, %v856_v51  ;;  %v990_v63 = vld [vmem:[%s2348_s14 + $0x8] sm:$0xff] }
 0x29d   : > { %v884_v17 = vmul.f32 %v2337_v0, %v2337_v0 }
 0x29f   : > { %v1765_v18 = vpop.eup %1764  ;;  %v892_v35 = vsub.f32 %v876_v16, %v884_v17 }
 0x2a0   : > { %v908_v19 = vmul.f32 %v1765_v18, %v899_v29  ;;  %vm914_vm7 = vweird.f32 %v1765_v18 }
 0x2a1   : > { %v900_v20 = vadd.f32 1e-05, %v892_v35  ;;  %vm915_vm9 = vmor %vm913_vm8, %vm914_vm7 }
 0x2a2   : > { %v909_v22 = vmul.f32 %v1765_v18, %v908_v19  ;;  %v859_v23 = vpop.xlane.xlu2 %858  ;;  %v811_v24 = vpop.xlane.xlu1 %810 }
 0x2a3   : > { %1766 = vrsqrt.f32 %v900_v20  ;;  %v2341_v25 = vmul.f32 0.00390625, %v811_v24  ;;  %v877_v32 = vmul.f32 0.00390625, %v859_v23  ;;  %vm923_vm11 = vweird.f32 %v900_v20 }
 0x2a4   : > { %v910_v26 = vmul.f32 0.5, %v909_v22 }
 0x2a5   : > { %v885_v36 = vmul.f32 %v2341_v25, %v2341_v25 }
 0x2a6   : > { %v911_v39 = vsub.f32 1.5, %v910_v26 }
 0x2a7   : > { %v893_v43 = vsub.f32 %v877_v32, %v885_v36 }
 0x2a8   : > { %v912_v45 = vmul.f32 %v1765_v18, %v911_v39 }
 0x2a9   : > { %v1767_v54 = vpop.eup %1766  ;;  %v901_v55 = vadd.f32 1e-05, %v893_v43  ;;  %1108 = vperm.xlu1 %1762, %v1082_v42  }
 0x2aa   : > { %v918_v30 = vmul.f32 %v1767_v54, %v900_v20  ;;  %v862_v56 = vpop.xlane.xlu0 %861  ;;  %v814_v57 = vpop.xlane.xlu2 %813  ;;  %v916_v31 = vsel %vm915_vm9, %v1765_v18, %v912_v45  ;;  %vm924_vm10 = vweird.f32 %v1767_v54 }
 0x2ab   : > { %1768 = vrsqrt.f32 %v901_v55  ;;  %v2354_v58 = vmul.f32 0.00390625, %v814_v57  ;;  %v997_v62 = vmul.f32 %v989_v49, %v916_v31  ;;  %v878_v7 = vmul.f32 0.00390625, %v862_v56  ;;  %vm925_vm12 = vmor %vm923_vm11, %vm924_vm10  ;;  %v991_v49 = vld [vmem:[%s2348_s14 + $0x10] sm:$0xff] }
 0x2ac   : > { %v919_v6 = vmul.f32 %v1767_v54, %v918_v30  ;;  %vm933_vm14 = vweird.f32 %v901_v55 }
 0x2ad   : > { %v886_v8 = vmul.f32 %v2354_v58, %v2354_v58  ;;  %1023 = vperm.xlu2 %1763, %v997_v62  }
 0x2ae   : > { %v920_v9 = vmul.f32 0.5, %v919_v6  ;;  %v1084_v6 = vld [vmem:[%s2317_s11 + $0x30] sm:$0xff] }
 0x2af   : > { %v894_v11 = vsub.f32 %v878_v7, %v886_v8 }
 0x2b0   : > { %v921_v13 = vsub.f32 1.5, %v920_v9 }
 0x2b1   : > { %v1769_v5 = vpop.eup %1768  ;;  %v902_v44 = vadd.f32 1e-05, %v894_v11 }
 0x2b2   : > { %v928_v60 = vmul.f32 %v1769_v5, %v901_v55  ;;  %v865_v14 = vpop.xlane.xlu1 %864  ;;  %v817_v29 = vpop.xlane.xlu2 %816  ;;  %v922_v51 = vmul.f32 %v1767_v54, %v921_v13  ;;  %vm934_vm13 = vweird.f32 %v1769_v5 }
 0x2b3   : > { %1770 = vrsqrt.f32 %v902_v44  ;;  %v2359_v16 = vmul.f32 0.00390625, %v817_v29  ;;  %v879_v35 = vmul.f32 0.00390625, %v865_v14  ;;  %vm935_vm15 = vmor %vm933_vm14, %vm934_vm13  ;;  %vm943_vm1 = vweird.f32 %v902_v44 }
 0x2b4   : > { %v926_v17 = vsel %vm925_vm12, %v1767_v54, %v922_v51  ;;  %v929_v18 = vmul.f32 %v1769_v5, %v928_v60 }
 0x2b5   : > { %v887_v19 = vmul.f32 %v2359_v16, %v2359_v16  ;;  %v998_v22 = vmul.f32 %v990_v63, %v926_v17 }
 0x2b6   : > { %v930_v23 = vmul.f32 0.5, %v929_v18 }
 0x2b7   : > { %v895_v24 = vsub.f32 %v879_v35, %v887_v19  ;;  %1028 = vperm.xlu0 %1761, %v998_v22  }
 0x2b8   : > { %v820_v26 = vpop.xlane.xlu0 %819  ;;  %v931_v32 = vsub.f32 1.5, %v930_v23 }
 0x2b9   : > { %v1771_v20 = vpop.eup %1770  ;;  %v903_v36 = vadd.f32 1e-05, %v895_v24  ;;  %v2363_v39 = vmul.f32 0.00390625, %v820_v26 }
 0x2ba   : > { %v938_v42 = vmul.f32 %v1771_v20, %v902_v44  ;;  %v868_v43 = vpop.xlane.xlu2 %867  ;;  %v932_v45 = vmul.f32 %v1769_v5, %v931_v32  ;;  %vm944_vm0 = vweird.f32 %v1771_v20 }
 0x2bb   : > { %1772 = vrsqrt.f32 %v903_v36  ;;  %v880_v54 = vmul.f32 0.00390625, %v868_v43  ;;  %v888_v30 = vmul.f32 %v2363_v39, %v2363_v39  ;;  %vm945_vm3 = vmor %vm943_vm1, %vm944_vm0  ;;  %vm953_vm6 = vweird.f32 %v903_v36  ;;  %v993_v43 = vld [vmem:[%s2348_s14 + $0x20] sm:$0xff] }
 0x2bc   : > { %v936_v56 = vsel %vm935_vm15, %v1769_v5, %v932_v45  ;;  %v939_v57 = vmul.f32 %v1771_v20, %v938_v42  ;;  %v992_v5 = vld [vmem:[%s2348_s14 + $0x18] sm:$0xff] }
 0x2bd   : > { %v896_v31 = vsub.f32 %v880_v54, %v888_v30  ;;  %v999_v62 = vmul.f32 %v991_v49, %v936_v56 }
 0x2be   : > { %v940_v7 = vmul.f32 0.5, %v939_v57 }
 0x2bf   : > { %v904_v8 = vadd.f32 1e-05, %v896_v31  ;;  %1033 = vperm.xlu1 %1762, %v999_v62   ;;  %1118 = vperm.xlu0 %1761, %v1084_v6   ;;  %v994_v31 = vld [vmem:[%s2348_s14 + $0x28] sm:$0xff] }
 0x2c0   : > { %v823_v9 = vpop.xlane.xlu1 %822  ;;  %v941_v11 = vsub.f32 1.5, %v940_v7 }
 0x2c1   : > { %v1773_v55 = vpop.eup %1772  ;;  %1774 = vrsqrt.f32 %v904_v8  ;;  %v2369_v13 = vmul.f32 0.00390625, %v823_v9  ;;  %vm963_vm9 = vweird.f32 %v904_v8 }
 0x2c2   : > { %v948_v60 = vmul.f32 %v1773_v55, %v903_v36  ;;  %v871_v14 = vpop.xlane.xlu0 %870  ;;  %v942_v29 = vmul.f32 %v1771_v20, %v941_v11  ;;  %vm954_vm4 = vweird.f32 %v1773_v55 }
 0x2c3   : > { %v881_v51 = vmul.f32 0.00390625, %v871_v14  ;;  %v889_v63 = vmul.f32 %v2369_v13, %v2369_v13  ;;  %vm955_vm7 = vmor %vm953_vm6, %vm954_vm4 }
 0x2c4   : > { %v946_v17 = vsel %vm945_vm3, %v1771_v20, %v942_v29  ;;  %v949_v18 = vmul.f32 %v1773_v55, %v948_v60  ;;  %v2378_v29 = vpop.permute.xlu2 %1098 }
 0x2c5   : > { %v897_v35 = vsub.f32 %v881_v51, %v889_v63  ;;  %v1000_v19 = vmul.f32 %v992_v5, %v946_v17 }
 0x2c6   : > { %v950_v22 = vmul.f32 0.5, %v949_v18 }
 0x2c7   : > { %v1775_v23 = vpop.eup %1774  ;;  %v905_v24 = vadd.f32 1e-05, %v897_v35  ;;  %1038 = vperm.xlu2 %1763, %v1000_v19   ;;  %1781 = vset.pattern.permute.xlu0 (%p351_p0), %v1817_v2 }
 0x2c8   : > { %v958_v26 = vmul.f32 %v1775_v23, %v904_v8  ;;  %v951_v32 = vsub.f32 1.5, %v950_v22  ;;  %vm964_vm8 = vweird.f32 %v1775_v23  ;;  %v1085_v8 = vld [vmem:[%s2317_s11 + $0x38] sm:$0xff]  ;;  %v1005_v22 = vsub.f32 %v2241_v27, %v2332_v12 }
 0x2c9   : > { %1776 = vrsqrt.f32 %v905_v24  ;;  %vm965_vm10 = vmor %vm963_vm9, %vm964_vm8  ;;  %vm973_vm12 = vweird.f32 %v905_v24 }
 0x2ca   : > { %v959_v44 = vmul.f32 %v1775_v23, %v958_v26  ;;  %v952_v42 = vmul.f32 %v1773_v55, %v951_v32 }
 0x2cc   : > { %v960_v45 = vmul.f32 0.5, %v959_v44  ;;  %v956_v49 = vsel %vm955_vm7, %v1773_v55, %v952_v42  ;;  %v995_v55 = vld [vmem:[%s2348_s14 + $0x30] sm:$0xff] }
 0x2cd   : > { %v1001_v20 = vmul.f32 %v993_v43, %v956_v49 }
 0x2ce   : > { %v961_v54 = vsub.f32 1.5, %v960_v45 }
 0x2cf   : > { %v1777_v30 = vpop.eup %1776  ;;  %1043 = vperm.xlu1 %1762, %v1001_v20  }
 0x2d0   : > { %v968_v56 = vmul.f32 %v1777_v30, %v905_v24  ;;  %v962_v57 = vmul.f32 %v1775_v23, %v961_v54  ;;  %vm974_vm11 = vweird.f32 %v1777_v30 }
 0x2d1   : > { %vm975_vm13 = vmor %vm973_vm12, %vm974_vm11 }
 0x2d2   : > { %v969_v62 = vmul.f32 %v1777_v30, %v968_v56  ;;  %v966_v6 = vsel %vm965_vm10, %v1775_v23, %v962_v57  ;;  %v1006_v23 = vsub.f32 %v2243_v33, %v2332_v12  ;;  %v996_v12 = vld [vmem:[%s2348_s14 + $0x38] sm:$0xff] }
 0x2d3   : > { %v1002_v7 = vmul.f32 %v994_v31, %v966_v6 }
 0x2d4   : > { %v970_v36 = vmul.f32 0.5, %v969_v62 }
 0x2d5   : > { %1048 = vperm.xlu2 %1763, %v1002_v7   ;;  %v1089_v26 = vpop.permute.xlu0 %1088  ;;  %v1011_v7 = vsub.f32 %v2271_v10, %v2354_v58 }
 0x2d6   : > { %v971_v9 = vsub.f32 1.5, %v970_v36  ;;  %v1012_v36 = vsub.f32 %v2273_v3, %v2354_v58 }
 0x2d8   : > { %v972_v11 = vmul.f32 %v1777_v30, %v971_v9  ;;  %v1094_v5 = vpop.permute.xlu1 %1093 }
 0x2da   : > { %v976_v60 = vsel %vm975_vm13, %v1777_v30, %v972_v11 }
 0x2db   : > { %v1003_v14 = vmul.f32 %v995_v55, %v976_v60  ;;  %v1083_v60 = vld [vmem:[%s2317_s11 + $0x28] sm:$0xff] }
 0x2dd   : > { %1053 = vperm.xlu1 %1762, %v1003_v14   ;;  %v1104_v6 = vpop.permute.xlu0 %1103 }
 0x2e5   : > { %1123 = vperm.xlu1 %1762, %v1085_v8  }
 0x2ed   :  { %1782 = vset.pattern.permute.xlu1 (%p351_p0), %v1817_v2 }
 0x2fb   : > { %v826_v51 = vpop.xlane.xlu2 %825 }
 0x2fc   : > { %v2380_v63 = vmul.f32 0.00390625, %v826_v51 }
 0x2fe   : > { %v890_v17 = vmul.f32 %v2380_v63, %v2380_v63 }
 0x303   : > { %v874_v18 = vpop.xlane.xlu1 %873 }
 0x304   : > { %v882_v35 = vmul.f32 0.00390625, %v874_v18  ;;  %v1007_v18 = vsub.f32 %v2251_v48, %v2337_v0 }
 0x306   : > { %v898_v19 = vsub.f32 %v882_v35, %v890_v17  ;;  %v1008_v35 = vsub.f32 %v2253_v50, %v2337_v0 }
 0x307   : > { %v1024_v24 = vpop.permute.xlu2 %1023 }
 0x308   : > { %v906_v32 = vadd.f32 1e-05, %v898_v19  ;;  %v1061_v44 = vmul.f32 %v1024_v24, %v1005_v22  ;;  %v1062_v42 = vmul.f32 %v1024_v24, %v1006_v23 }
 0x30a   : > { %1778 = vrsqrt.f32 %v906_v32  ;;  %v1126_v43 = vadd.f32 %v1089_v26, %v1061_v44  ;;  %v1127_v45 = vadd.f32 %v1089_v26, %v1062_v42  ;;  %vm983_vm15 = vweird.f32 %v906_v32 }
 0x30b   : > { %v1010_v44 = vsub.f32 %v2263_v1, %v2341_v25 }
 0x30c   : > { %v1142_v49 = vmax.f32 %v1126_v43, 0.0  ;;  %v1143_v20 = vmax.f32 %v1127_v45, 0.0 }
 0x30e   : > { %1158 = vst [vmem:[#allocation2 + $0x30] sm:$0xff] %v1142_v49 }
 0x30f   : > { %1159 = vst [vmem:[#allocation2] sm:$0xff] %v1143_v20 }
 0x310   : > { %v1779_v54 = vpop.eup %1778 }
 0x311   : > { %v978_v30 = vmul.f32 %v1779_v54, %v906_v32  ;;  %vm984_vm14 = vweird.f32 %v1779_v54  ;;  %v1009_v32 = vsub.f32 %v2261_v59, %v2341_v25  ;;  %v1014_v59 = vsub.f32 %v2283_v15, %v2359_v16 }
 0x312   : > { %vm985_vm0 = vmor %vm983_vm15, %vm984_vm14 }
 0x313   : > { %v979_v56 = vmul.f32 %v1779_v54, %v978_v30 }
 0x315   : > { %v980_v27 = vmul.f32 0.5, %v979_v56 }
 0x317   : > { %v981_v57 = vsub.f32 1.5, %v980_v27 }
 0x319   : > { %v982_v33 = vmul.f32 %v1779_v54, %v981_v57  ;;  %v1018_v57 = vsub.f32 %v2303_v40, %v2369_v13 }
 0x31b   : > { %v986_v31 = vsel %vm985_vm0, %v1779_v54, %v982_v33  ;;  %v1109_v10 = vpop.permute.xlu1 %1108 }
 0x31c   : > { %v1004_v62 = vmul.f32 %v996_v12, %v986_v31 }
 0x31e   : > { %1058 = vperm.xlu2 %1763, %v1004_v62  }
 0x321   : > { %v1039_v9 = vpop.permute.xlu2 %1038 }
 0x322   : > { %v1067_v11 = vmul.f32 %v1039_v9, %v1011_v7  ;;  %v1068_v55 = vmul.f32 %v1039_v9, %v1012_v36  ;;  %v1019_v36 = vsub.f32 %v2322_v28, %v2380_v63 }
 0x324   : > { %v1132_v14 = vadd.f32 %v1104_v6, %v1067_v11  ;;  %v1133_v8 = vadd.f32 %v1104_v6, %v1068_v55 }
 0x326   : > { %v1148_v51 = vmax.f32 %v1132_v14, 0.0  ;;  %v1149_v17 = vmax.f32 %v1133_v8, 0.0  ;;  %1113 = vperm.xlu2 %1763, %v1083_v60   ;;  %v1015_v14 = vsub.f32 %v2291_v21, %v2363_v39  ;;  %v1016_v8 = vsub.f32 %v2293_v41, %v2363_v39  ;;  %v2427_v39 = vld [vmem:[#allocation2 + $0x30] sm:$0xff] (%p351_p0) }
 0x327   :  { %1190 = vrot.lane.b32.xlu0 (%p351_p0), %v2427_v39, %s1819_s26 }
 0x328   : > { %1164 = vst [vmem:[#allocation2 + $0x8] sm:$0xff] %v1148_v51 }
 0x329   : > { %1165 = vst [vmem:[#allocation2 + $0x48] sm:$0xff] %v1149_v17  ;;  %v1029_v19 = vpop.permute.xlu0 %1028 }
 0x32a   : > { %v1063_v3 = vmul.f32 %v1029_v19, %v1007_v18  ;;  %v1064_v58 = vmul.f32 %v1029_v19, %v1008_v35 }
 0x32c   : > { %v1128_v22 = vadd.f32 %v1094_v5, %v1063_v3  ;;  %v1129_v23 = vadd.f32 %v1094_v5, %v1064_v58  ;;  %v1013_v5 = vsub.f32 %v2281_v61, %v2359_v16 }
 0x32e   : > { %v1144_v24 = vmax.f32 %v1128_v22, 0.0  ;;  %v1145_v26 = vmax.f32 %v1129_v23, 0.0  ;;  %1780 = vset.pattern.permute.xlu2 (%p351_p0), %v1817_v2 }
 0x32f   : > { %v1049_v7 = vpop.permute.xlu2 %1048  ;;  %v2440_v58 = vld [vmem:[#allocation2 + $0x8] sm:$0xff] (%p351_p0) }
 0x330   : > { %1160 = vst [vmem:[#allocation2 + $0x58] sm:$0xff] %v1144_v24  ;;  %v1071_v18 = vmul.f32 %v1049_v7, %v1015_v14  ;;  %v1072_v35 = vmul.f32 %v1049_v7, %v1016_v8  ;;  %v2446_v24 = vld [vmem:[#allocation2] sm:$0xff] (%p351_p0)  ;;  %v2458_v2 = vld [vmem:[#allocation2 + $0x48] sm:$0xff] (%p351_p0) }
 0x331   : > { %1161 = vst [vmem:[#allocation2 + $0x18] sm:$0xff] %v1145_v26  ;;  %v1034_v48 = vpop.permute.xlu1 %1033  ;;  %v1119_v61 = vpop.permute.xlu0 %1118 }
 0x332   : > { %v1065_v42 = vmul.f32 %v1034_v48, %v1009_v32  ;;  %v1066_v50 = vmul.f32 %v1034_v48, %v1010_v44 }
 0x334   : > { %v1130_v0 = vadd.f32 %v2378_v29, %v1065_v42  ;;  %v1131_v43 = vadd.f32 %v2378_v29, %v1066_v50  ;;  %v1017_v29 = vsub.f32 %v2301_v37, %v2369_v13  ;;  %v1020_v37 = vsub.f32 %v2324_v4, %v2380_v63 }
 0x336   : > { %v1146_v45 = vmax.f32 %v1130_v0, 0.0  ;;  %v1147_v49 = vmax.f32 %v1131_v43, 0.0  ;;  %v1366_v43 = vld [vmem:[%s2819_s5] sm:$0xff] (%p351_p0) }
 0x337   :  { %v2442_v22 = vld [vmem:[#allocation2 + $0x58] sm:$0xff] (%p351_p0) }
 0x338   : > { %1162 = vst [vmem:[#allocation2 + $0x50] sm:$0xff] %v1146_v45  ;;  %1192 = vrot.lane.b32.xlu0 (%p351_p0), %v2442_v22, %s1819_s26  ;;  %v2460_v44 = vld [vmem:[#allocation2 + $0x18] sm:$0xff] (%p351_p0) }
 0x339   : > { %1163 = vst [vmem:[#allocation2 + $0x68] sm:$0xff] %v1147_v49  ;;  %v1369_v45 = vld [vmem:[%s2819_s5 + $0x18] sm:$0xff] (%p351_p0)  ;;  %v1368_v49 = vld [vmem:[%s2819_s5 + $0x10] sm:$0xff] (%p351_p0) }
 0x33f   :  { %v2425_v41 = vld [vmem:[#allocation2 + $0x50] sm:$0xff] (%p351_p0) }
 0x340   :  { %1194 = vrot.lane.b32.xlu1 (%p351_p0), %v2425_v41, %s1819_s26  ;;  %v2454_v32 = vld [vmem:[#allocation2 + $0x68] sm:$0xff] (%p351_p0) }
 0x341   : > { %v1044_v20 = vpop.permute.xlu1 %1043 }
 0x342   : > { %v1069_v1 = vmul.f32 %v1044_v20, %v1013_v5  ;;  %v1070_v25 = vmul.f32 %v1044_v20, %v1014_v59  ;;  %v1367_v5 = vld [vmem:[%s2819_s5 + $0x8] sm:$0xff] (%p351_p0) }
 0x343   :  { %v1371_v20 = vld [vmem:[%s2819_s5 + $0x28] sm:$0xff] (%p351_p0) }
 0x344   : > { %v1134_v54 = vadd.f32 %v1109_v10, %v1069_v1  ;;  %v1135_v30 = vadd.f32 %v1109_v10, %v1070_v25  ;;  %v1370_v1 = vld [vmem:[%s2819_s5 + $0x20] sm:$0xff] (%p351_p0)  ;;  %v1372_v25 = vld [vmem:[%s2819_s5 + $0x30] sm:$0xff] (%p351_p0) }
 0x346   : > { %v1150_v56 = vmax.f32 %v1134_v54, 0.0  ;;  %v1151_v27 = vmax.f32 %v1135_v30, 0.0  ;;  %v1374_v30 = vld [vmem:[%s2819_s5 + $0x40] sm:$0xff] (%p351_p0) }
 0x348   : > { %1166 = vst [vmem:[#allocation2 + $0x40] sm:$0xff] %v1150_v56  ;;  %1196 = vrot.lane.b32.xlu1 (%p351_p0), %v2440_v58, %s1819_s26  ;;  %v1373_v56 = vld [vmem:[%s2819_s5 + $0x38] sm:$0xff] (%p351_p0) }
 0x349   : > { %1167 = vst [vmem:[#allocation2 + $0x20] sm:$0xff] %v1151_v27  ;;  %v1375_v27 = vld [vmem:[%s2819_s5 + $0x48] sm:$0xff] (%p351_p0) }
 0x34f   : > { %v1054_v33 = vpop.permute.xlu1 %1053  ;;  %v2423_v21 = vld [vmem:[#allocation2 + $0x40] sm:$0xff] (%p351_p0) }
 0x350   : > { %v1073_v12 = vmul.f32 %v1054_v33, %v1017_v29  ;;  %v1074_v31 = vmul.f32 %v1054_v33, %v1018_v57  ;;  %1198 = vrot.lane.b32.xlu2 (%p351_p0), %v2423_v21, %s1819_s26  ;;  %v2466_v50 = vld [vmem:[#allocation2 + $0x20] sm:$0xff] (%p351_p0)  ;;  %v1377_v57 = vld [vmem:[%s2819_s5 + $0x58] sm:$0xff] (%p351_p0)  ;;  %v1376_v33 = vld [vmem:[%s2819_s5 + $0x50] sm:$0xff] (%p351_p0) }
 0x352   : > { %v1138_v15 = vadd.f32 %v1119_v61, %v1073_v12  ;;  %v1139_v16 = vadd.f32 %v1119_v61, %v1074_v31  ;;  %v1378_v61 = vld [vmem:[%s2819_s5 + $0x60] sm:$0xff] (%p351_p0) }
 0x354   : > { %v1154_v62 = vmax.f32 %v1138_v15, 0.0  ;;  %v1155_v6 = vmax.f32 %v1139_v16, 0.0 }
 0x356   : > { %1170 = vst [vmem:[#allocation2 + $0x60] sm:$0xff] %v1154_v62 }
 0x357   : > { %1171 = vst [vmem:[#allocation2 + $0x70] sm:$0xff] %v1155_v6  ;;  %v1124_v13 = vpop.permute.xlu1 %1123 }
 0x35d   :  { %v2448_v26 = vld [vmem:[#allocation2 + $0x60] sm:$0xff] (%p351_p0) }
 0x35e   :  { %v2464_v42 = vld [vmem:[#allocation2 + $0x70] sm:$0xff] (%p351_p0)  ;;  %1202 = vrot.lane.b32.xlu0 (%p351_p0), %v2448_v26, %s1819_s26 }
 0x366   :  { %1208 = vrot.lane.b32.xlu0 (%p351_p0), %v2460_v44, %s1819_s26 }
 0x36e   :  { %1214 = vrot.lane.b32.xlu0 (%p351_p0), %v2466_v50, %s1819_s26 }
 0x378   : > { %v1059_v9 = vpop.permute.xlu2 %1058 }
 0x379   : > { %v1075_v11 = vmul.f32 %v1059_v9, %v1019_v36  ;;  %v1076_v40 = vmul.f32 %v1059_v9, %v1020_v37  ;;  %v1380_v36 = vld [vmem:[%s2819_s5 + $0x70] sm:$0xff] (%p351_p0)  ;;  %v1379_v37 = vld [vmem:[%s2819_s5 + $0x68] sm:$0xff] (%p351_p0)  ;;  %v1381_v9 = vld [vmem:[%s2819_s5 + $0x78] sm:$0xff] (%p351_p0) }
 0x37b   : > { %v1140_v55 = vadd.f32 %v1124_v13, %v1075_v11  ;;  %v1141_v60 = vadd.f32 %v1124_v13, %v1076_v40 }
 0x37d   : > { %v1156_v51 = vmax.f32 %v1140_v55, 0.0  ;;  %v1157_v17 = vmax.f32 %v1141_v60, 0.0 }
 0x37f   : > { %1172 = vst [vmem:[#allocation2 + $0x78] sm:$0xff] %v1156_v51  ;;  %v1383_v51 = vld [vmem:[%s2819_s5 + $0x88] sm:$0xff] (%p351_p0) }
 0x380   : > { %1173 = vst [vmem:[#allocation2 + $0x28] sm:$0xff] %v1157_v17  ;;  %v1114_v28 = vpop.permute.xlu2 %1113  ;;  %v1382_v17 = vld [vmem:[%s2819_s5 + $0x80] sm:$0xff] (%p351_p0) }
 0x381   : > { %v1136_v4 = vadd.f32 %v1114_v28, %v1071_v18  ;;  %v1137_v63 = vadd.f32 %v1114_v28, %v1072_v35  ;;  %v1384_v18 = vld [vmem:[%s2819_s5 + $0x90] sm:$0xff] (%p351_p0) }
 0x382   :  { %353 = sbr.rel (!%p351_p0) target bundleno = 200 (0xc8), region = 56 }
 0x383   : > { %v1152_v10 = vmax.f32 %v1136_v4, 0.0  ;;  %v1153_v19 = vmax.f32 %v1137_v63, 0.0 }
 0x385   : > { %1168 = vst [vmem:[#allocation2 + $0x10] sm:$0xff] %v1152_v10 }
 0x386   : > { %1169 = vst [vmem:[#allocation2 + $0x38] sm:$0xff] %v1153_v19  ;;  %v2444_v23 = vld [vmem:[#allocation2 + $0x78] sm:$0xff] (%p351_p0) }
 0x387   :  { %v2468_v0 = vld [vmem:[#allocation2 + $0x28] sm:$0xff]  ;;  %1204 = vrot.lane.b32.xlu1 %v2444_v23, %s1819_s26 }
 0x388   :  { %1220 = vrot.lane.b32.xlu0 %v2468_v0, %s1819_s26 }
 0x38c   :  { %v2437_v3 = vld [vmem:[#allocation2 + $0x10] sm:$0xff] }
 0x38d   :  { %1200 = vrot.lane.b32.xlu2 %v2437_v3, %s1819_s26  ;;  %v2462_v48 = vld [vmem:[#allocation2 + $0x38] sm:$0xff] }
 0x38f   :  { %1210 = vrot.lane.b32.xlu1 %v2454_v32, %s1819_s26 }
 0x390   :  { %1258 = vrot.lane.b32.xlu0 %v2425_v41, %s1818_s25 }
 0x395   :  { %1206 = vrot.lane.b32.xlu2 %v2446_v24, %s1819_s26 }
 0x397   :  { %1216 = vrot.lane.b32.xlu1 %v2462_v48, %s1819_s26 }
 0x398   :  { %1264 = vrot.lane.b32.xlu0 %v2437_v3, %s1818_s25 }
 0x399   :  { %v1191_v15 = vpop.permute.xlu0 %1190 }
 0x39d   :  { %1212 = vrot.lane.b32.xlu2 %v2458_v2, %s1819_s26 }
 0x39f   :  { %1254 = vrot.lane.b32.xlu1 %v2427_v39, %s1818_s25 }
 0x3a0   :  { %1270 = vrot.lane.b32.xlu0 %v2446_v24, %s1818_s25 }
 0x3a5   :  { %1218 = vrot.lane.b32.xlu2 %v2464_v42, %s1819_s26 }
 0x3a7   :  { %1260 = vrot.lane.b32.xlu1 %v2440_v58, %s1818_s25 }
 0x3a8   :  { %1276 = vrot.lane.b32.xlu0 %v2458_v2, %s1818_s25 }
 0x3aa   :  { %v2534_v59 = vpop.permute.xlu2 %1198  ;;  %v1193_v60 = vpop.permute.xlu0 %1192 }
 0x3ad   :  { %1256 = vrot.lane.b32.xlu2 %v2442_v22, %s1818_s25 }
 0x3af   :  { %1266 = vrot.lane.b32.xlu1 %v2448_v26, %s1818_s25 }
 0x3b0   :  { %1282 = vrot.lane.b32.xlu0 %v2464_v42, %s1818_s25 }
 0x3b2   :  { %v1195_v12 = vpop.permute.xlu1 %1194 }
 0x3b5   :  { %1262 = vrot.lane.b32.xlu2 %v2423_v21, %s1818_s25 }
 0x3b7   :  { %1272 = vrot.lane.b32.xlu1 %v2460_v44, %s1818_s25 }
 0x3b8   :  { %1445 = vperm.xlu0 %1781, %v1367_v5   ;;  %v1387_v5 = vld [vmem:[%s2819_s5 + $0xa8] sm:$0xff] }
 0x3ba   :  { %v1197_v11 = vpop.permute.xlu1 %1196 }
 0x3bd   :  { %1268 = vrot.lane.b32.xlu2 %v2444_v23, %s1818_s25 }
 0x3bf   :  { %1278 = vrot.lane.b32.xlu1 %v2466_v50, %s1818_s25 }
 0x3c0   :  { %1470 = vperm.xlu0 %1781, %v1372_v25  }
 0x3c5   :  { %1274 = vrot.lane.b32.xlu2 %v2454_v32, %s1818_s25 }
 0x3c7   :  { %1284 = vrot.lane.b32.xlu1 %v2468_v0, %s1818_s25 }
 0x3c8   :  { %1485 = vperm.xlu0 %1781, %v1375_v27  }
 0x3cd   :  { %1280 = vrot.lane.b32.xlu2 %v2462_v48, %s1818_s25 }
 0x3cf   :  { %1450 = vperm.xlu1 %1782, %v1368_v49   ;;  %v1385_v49 = vld [vmem:[%s2819_s5 + $0x98] sm:$0xff] }
 0x3d0   :  { %1500 = vperm.xlu0 %1781, %v1378_v61   ;;  %v1203_v4 = vpop.permute.xlu0 %1202 }
 0x3d5   :  { %1440 = vperm.xlu2 %1780, %v1366_v43  }
 0x3d7   :  { %1460 = vperm.xlu1 %1782, %v1370_v1  }
 0x3d8   :  { %1515 = vperm.xlu0 %1781, %v1381_v9  }
 0x3dd   :  { %1455 = vperm.xlu2 %1780, %v1369_v45   ;;  %v1386_v45 = vld [vmem:[%s2819_s5 + $0xa0] sm:$0xff] }
 0x3df   :  { %1475 = vperm.xlu1 %1782, %v1373_v56   ;;  %v1209_v56 = vpop.permute.xlu0 %1208 }
 0x3e0   :  { %1530 = vperm.xlu0 %1781, %v1384_v18  }
 0x3e5   :  { %1465 = vperm.xlu2 %1780, %v1371_v20  }
 0x3e7   :  { %v2545_v54 = vpop.permute.xlu2 %1200  ;;  %1490 = vperm.xlu1 %1782, %v1376_v33   ;;  %v1231_v33 = vsel %vm73_vm2, %v1209_v56, %v1193_v60 }
 0x3e8   :  { %1545 = vperm.xlu0 %1781, %v1387_v5   ;;  %v2637_v61 = vmul.f32 %v1974_v46, %v1231_v33 }
 0x3ed   :  { %1480 = vperm.xlu2 %1780, %v1374_v30  }
 0x3ef   :  { %v1207_v29 = vpop.permute.xlu2 %1206  ;;  %1505 = vperm.xlu1 %1782, %v1379_v37   ;;  %v1215_v37 = vpop.permute.xlu0 %1214 }
 0x3f0   :  { %v1222_v16 = vsel %vm73_vm2, %v1191_v15, %v1207_v29  ;;  %v1230_v62 = vsel %vm73_vm2, %v1207_v29, %v1191_v15  ;;  %v1388_v15 = vld [vmem:[%s2819_s5 + $0xb0] sm:$0xff] }
 0x3f1   :  { %v2570_v6 = vmul.f32 %v1974_v46, %v1230_v62  ;;  %v2573_v7 = vmul.f32 %v1976_v47, %v1222_v16 }
 0x3f5   :  { %1495 = vperm.xlu2 %1780, %v1377_v57   ;;  %v1223_v57 = vsel %vm73_vm2, %v1193_v60, %v1209_v56 }
 0x3f7   :  { %v1213_v31 = vpop.permute.xlu2 %1212  ;;  %1520 = vperm.xlu1 %1782, %v1382_v17  }
 0x3f8   :  { %v1225_v13 = vsel %vm73_vm2, %v1197_v11, %v1213_v31  ;;  %v1233_v55 = vsel %vm73_vm2, %v1213_v31, %v1197_v11  ;;  %v2640_v31 = vmul.f32 %v1976_v47, %v1223_v57 }
 0x3f9   :  { %v2589_v14 = vmul.f32 %v1974_v46, %v1233_v55  ;;  %v2592_v8 = vmul.f32 %v1976_v47, %v1225_v13  ;;  %v1205_v35 = vpop.permute.xlu1 %1204  ;;  %v1226_v13 = vsel %vm73_vm2, %v2534_v59, %v1215_v37  ;;  %v1234_v55 = vsel %vm73_vm2, %v1215_v37, %v2534_v59 }
 0x3fa   :  { %v2667_v60 = vmul.f32 %v1974_v46, %v1234_v55  ;;  %v1221_v17 = vpop.permute.xlu0 %1220 }
 0x3fb   :  { %v1229_v18 = vsel %vm73_vm2, %v1205_v35, %v1221_v17 }
 0x3fd   :  { %1510 = vperm.xlu2 %1780, %v1380_v36  }
 0x3ff   :  { %v1219_v40 = vpop.permute.xlu2 %1218  ;;  %1535 = vperm.xlu1 %1782, %v1385_v49  }
 0x400   :  { %v1228_v63 = vsel %vm73_vm2, %v1203_v4, %v1219_v40  ;;  %v1236_v10 = vsel %vm73_vm2, %v1219_v40, %v1203_v4  ;;  %v1237_v4 = vsel %vm73_vm2, %v1221_v17, %v1205_v35 }
 0x401   :  { %v2608_v19 = vmul.f32 %v1974_v46, %v1236_v10  ;;  %v2611_v43 = vmul.f32 %v1976_v47, %v1228_v63  ;;  %v1211_v20 = vpop.permute.xlu1 %1210  ;;  %v2677_v63 = vmul.f32 %v1974_v46, %v1237_v4  ;;  %v2680_v10 = vmul.f32 %v1976_v47, %v1229_v18 }
 0x402   :  { %v1224_v25 = vsel %vm73_vm2, %v1195_v12, %v1211_v20  ;;  %v1232_v30 = vsel %vm73_vm2, %v1211_v20, %v1195_v12  ;;  %v1389_v12 = vld [vmem:[%s2819_s5 + $0xb8] sm:$0xff]  ;;  %v1259_v49 = vpop.permute.xlu0 %1258  ;;  %s1824_s5 = smov [#allocation4]  }
 0x403   :  { %v2627_v27 = vmul.f32 %v1974_v46, %v1232_v30  ;;  %v2630_v29 = vmul.f32 %v1976_v47, %v1224_v25  ;;  %s1680_s29 = sshll.u32 %s1824_s5, 4  ;;  %s1681_s29 = int_to_ptr.vmem [resolvable:$true] %s1680_s29 }
 0x405   :  { %1525 = vperm.xlu2 %1780, %v1383_v51  }
 0x407   :  { %v1257_v28 = vpop.permute.xlu2 %1256  ;;  %1550 = vperm.xlu1 %1782, %v1388_v15  }
 0x409   :  { %v1217_v16 = vpop.permute.xlu1 %1216 }
 0x40a   :  { %v1227_v62 = vsel %vm73_vm2, %v2545_v54, %v1217_v16  ;;  %v1235_v36 = vsel %vm73_vm2, %v1217_v16, %v2545_v54  ;;  %v2670_v54 = vmul.f32 %v1976_v47, %v1226_v13  ;;  %v1265_v56 = vpop.permute.xlu0 %1264  ;;  %vm1667_vm2 = vcmask 1040384  }
 0x40b   :  { %v2655_v9 = vmul.f32 %v1974_v46, %v1235_v36  ;;  %v2658_v11 = vmul.f32 %v1976_v47, %v1227_v62 }
 0x40d   :  { %1540 = vperm.xlu2 %1780, %v1386_v45  }
 0x40f   :  { %v1263_v1 = vpop.permute.xlu2 %1262 }
 0x411   :  { %v1255_v51 = vpop.permute.xlu1 %1254 }
 0x412   :  { %v1271_v37 = vpop.permute.xlu0 %1270 }
 0x413   :  { %v1286_v17 = vsel %vm82_vm5, %v1255_v51, %v1271_v37  ;;  %v1294_v18 = vsel %vm82_vm5, %v1271_v37, %v1255_v51 }
 0x414   :  { %v2717_v4 = vmul.f32 %v1984_v52, %v1286_v17 }
 0x415   :  { %1555 = vperm.xlu2 %1780, %v1389_v12  }
 0x417   :  { %v1269_v40 = vpop.permute.xlu2 %1268 }
 0x419   :  { %v1261_v45 = vpop.permute.xlu1 %1260 }
 0x41f   :  { %v1275_v59 = vpop.permute.xlu2 %1274 }
 0x420   :  { %v1288_v5 = vsel %vm82_vm5, %v1259_v49, %v1275_v59  ;;  %v1296_v20 = vsel %vm82_vm5, %v1275_v59, %v1259_v49  ;;  %v2720_v59 = vmul.f32 %v1986_v53, %v1294_v18 }
 0x421   :  { %v2687_v25 = vmul.f32 %v1984_v52, %v1288_v5  ;;  %v2690_v35 = vmul.f32 %v1986_v53, %v1296_v20  ;;  %v1267_v30 = vpop.permute.xlu1 %1266  ;;  %v1277_v20 = vpop.permute.xlu0 %1276 }
 0x427   :  { %v1281_v46 = vpop.permute.xlu2 %1280 }
 0x428   :  { %v1291_v47 = vsel %vm82_vm5, %v1265_v56, %v1281_v46  ;;  %v1299_v57 = vsel %vm82_vm5, %v1281_v46, %v1265_v56 }
 0x429   :  { %v2697_v33 = vmul.f32 %v1984_v52, %v1291_v47  ;;  %v2700_v12 = vmul.f32 %v1986_v53, %v1299_v57  ;;  %v1273_v16 = vpop.permute.xlu1 %1272  ;;  %v1289_v47 = vsel %vm82_vm5, %v1261_v45, %v1277_v20  ;;  %v1297_v57 = vsel %vm82_vm5, %v1277_v20, %v1261_v45  ;;  %v1283_v17 = vpop.permute.xlu0 %1282 }
 0x42a   :  { %v1287_v62 = vsel %vm82_vm5, %v1257_v28, %v1273_v16  ;;  %v1295_v36 = vsel %vm82_vm5, %v1273_v16, %v1257_v28  ;;  %v2737_v16 = vmul.f32 %v1984_v52, %v1289_v47  ;;  %v1292_v45 = vsel %vm82_vm5, %v1267_v30, %v1283_v17 }
 0x42b   :  { %v2707_v13 = vmul.f32 %v1984_v52, %v1287_v62  ;;  %v2710_v55 = vmul.f32 %v1986_v53, %v1295_v36  ;;  %v2740_v62 = vmul.f32 %v1986_v53, %v1297_v57 }
 0x42f   :  { %v1441_v15 = vpop.permute.xlu2 %1440 }
 0x431   :  { %v1279_v28 = vpop.permute.xlu1 %1278  ;;  %v1446_v57 = vpop.permute.xlu0 %1445 }
 0x432   :  { %v1290_v49 = vsel %vm82_vm5, %v1263_v1, %v1279_v28  ;;  %v1298_v5 = vsel %vm82_vm5, %v1279_v28, %v1263_v1  ;;  %v1561_v34 = vmul.f32 %v1446_v57, %v2640_v31 }
 0x433   :  { %v2727_v56 = vmul.f32 %v1984_v52, %v1290_v49  ;;  %v2730_v51 = vmul.f32 %v1986_v53, %v1298_v5  ;;  %v1300_v49 = vsel %vm82_vm5, %v1283_v17, %v1267_v30  ;;  %v2757_v5 = vmul.f32 %v1984_v52, %v1292_v45 }
 0x434   :  { %v2760_v20 = vmul.f32 %v1986_v53, %v1300_v49 }
 0x436   :  { %2824 = vst [vmem:[#allocation9_spill] sm:$0xff] %v2760_v20 }
 0x437   :  { %v1456_v46 = vpop.permute.xlu2 %1455 }
 0x438   :  { %v1565_v45 = vmul.f32 %v1456_v46, %v2592_v8 }
 0x439   :  { %v1285_v1 = vpop.permute.xlu1 %1284 }
 0x43a   :  { %v1293_v36 = vsel %vm82_vm5, %v1269_v40, %v1285_v1  ;;  %v1301_v37 = vsel %vm82_vm5, %v1285_v1, %v1269_v40  ;;  %v1558_v1 = vmul.f32 %v1441_v15, %v2570_v6 }
 0x43b   :  { %v2747_v18 = vmul.f32 %v1984_v52, %v1293_v36  ;;  %v2750_v28 = vmul.f32 %v1986_v53, %v1301_v37  ;;  %v1559_v36 = vmul.f32 %v1441_v15, %v2573_v7  ;;  %v1560_v37 = vmul.f32 %v1446_v57, %v2637_v61  ;;  %v1471_v15 = vpop.permute.xlu0 %1470 }
 0x43c   :  { %v1564_v53 = vmul.f32 %v1456_v46, %v2589_v14  ;;  %v1570_v8 = vmul.f32 %v1471_v15, %v2608_v19  ;;  %v1571_v46 = vmul.f32 %v1471_v15, %v2611_v43 }
 0x43d   :  { %2822 = vst [vmem:[#allocation7_spill] sm:$0xff] %v2747_v18  ;;  %v1606_v52 = vadd.f32 %v1560_v37, %v1558_v1  ;;  %v1635_v17 = vadd.f32 %v1561_v34, %v1559_v36 }
 0x43e   :  { %2823 = vst [vmem:[#allocation8_spill] sm:$0xff] %v2750_v28 }
 0x43f   :  { %v1466_v40 = vpop.permute.xlu2 %1465 }
 0x441   :  { %v1451_v47 = vpop.permute.xlu1 %1450 }
 0x442   :  { %v1562_v38 = vmul.f32 %v1451_v47, %v2627_v27  ;;  %v1563_v30 = vmul.f32 %v1451_v47, %v2630_v29  ;;  %v1568_v27 = vmul.f32 %v1466_v40, %v2655_v9  ;;  %v1569_v29 = vmul.f32 %v1466_v40, %v2658_v11 }
 0x443   :  { %v1486_v37 = vpop.permute.xlu0 %1485 }
 0x444   :  { %v1607_v28 = vadd.f32 %v1606_v52, %v1562_v38  ;;  %v1636_v18 = vadd.f32 %v1635_v17, %v1563_v30  ;;  %v1576_v19 = vmul.f32 %v1486_v37, %v2442_v22  ;;  %v1577_v43 = vmul.f32 %v1486_v37, %v2460_v44 }
 0x446   :  { %v1608_v20 = vadd.f32 %v1607_v28, %v1564_v53  ;;  %v1637_v7 = vadd.f32 %v1636_v18, %v1565_v45 }
 0x447   :  { %v1481_v49 = vpop.permute.xlu2 %1480 }
 0x448   :  { %v1574_v9 = vmul.f32 %v1481_v49, %v2427_v39  ;;  %v1575_v11 = vmul.f32 %v1481_v49, %v2446_v24 }
 0x449   :  { %v1461_v6 = vpop.permute.xlu1 %1460 }
 0x44a   :  { %v1566_v61 = vmul.f32 %v1461_v6, %v2667_v60  ;;  %v1567_v31 = vmul.f32 %v1461_v6, %v2670_v54 }
 0x44b   :  { %v1501_v45 = vpop.permute.xlu0 %1500 }
 0x44c   :  { %v1609_v34 = vadd.f32 %v1608_v20, %v1566_v61  ;;  %v1638_v47 = vadd.f32 %v1637_v7, %v1567_v31  ;;  %v1582_v22 = vmul.f32 %v1501_v45, %v2423_v21  ;;  %v1583_v44 = vmul.f32 %v1501_v45, %v2466_v50 }
 0x44e   :  { %v1610_v14 = vadd.f32 %v1609_v34, %v1568_v27  ;;  %v1639_v57 = vadd.f32 %v1638_v47, %v1569_v29 }
 0x44f   :  { %v1496_v1 = vpop.permute.xlu2 %1495 }
 0x450   :  { %v1611_v18 = vadd.f32 %v1610_v14, %v1570_v8  ;;  %v1640_v36 = vadd.f32 %v1639_v57, %v1571_v46  ;;  %v1580_v39 = vmul.f32 %v1496_v1, %v2440_v58  ;;  %v1581_v24 = vmul.f32 %v1496_v1, %v2458_v2 }
 0x451   :  { %v1476_v28 = vpop.permute.xlu1 %1475 }
 0x452   :  { %v1572_v60 = vmul.f32 %v1476_v28, %v2677_v63  ;;  %v1573_v54 = vmul.f32 %v1476_v28, %v2680_v10 }
 0x453   :  { %v1516_v34 = vpop.permute.xlu0 %1515 }
 0x454   :  { %v1612_v20 = vadd.f32 %v1611_v18, %v1572_v60  ;;  %v1641_v40 = vadd.f32 %v1640_v36, %v1573_v54  ;;  %v1588_v21 = vmul.f32 %v1516_v34, %v2444_v23  ;;  %v1589_v50 = vmul.f32 %v1516_v34, %v2468_v0 }
 0x456   :  { %v1642_v38 = vadd.f32 %v1641_v40, %v1575_v11  ;;  %v1613_v30 = vadd.f32 %v1612_v20, %v1574_v9 }
 0x457   :  { %v1511_v6 = vpop.permute.xlu2 %1510 }
 0x458   :  { %v1614_v17 = vadd.f32 %v1613_v30, %v1576_v19  ;;  %v1643_v53 = vadd.f32 %v1642_v38, %v1577_v43  ;;  %v1586_v58 = vmul.f32 %v1511_v6, %v2448_v26  ;;  %v1587_v2 = vmul.f32 %v1511_v6, %v2464_v42 }
 0x459   :  { %v1491_v52 = vpop.permute.xlu1 %1490 }
 0x45a   :  { %v1578_v63 = vmul.f32 %v1491_v52, %v2425_v41  ;;  %v1579_v10 = vmul.f32 %v1491_v52, %v2454_v32 }
 0x45b   :  { %v1531_v36 = vpop.permute.xlu0 %1530 }
 0x45c   :  { %v1615_v49 = vadd.f32 %v1614_v17, %v1578_v63  ;;  %v1644_v7 = vadd.f32 %v1643_v53, %v1579_v10  ;;  %v1594_v23 = vmul.f32 %v1531_v36, %v2687_v25  ;;  %v1595_v0 = vmul.f32 %v1531_v36, %v2690_v35 }
 0x45e   :  { %v1645_v61 = vadd.f32 %v1644_v7, %v1581_v24  ;;  %v1616_v31 = vadd.f32 %v1615_v49, %v1580_v39 }
 0x45f   :  { %v1526_v57 = vpop.permute.xlu2 %1525 }
 0x460   :  { %v1617_v27 = vadd.f32 %v1616_v31, %v1582_v22  ;;  %v1646_v29 = vadd.f32 %v1645_v61, %v1583_v44  ;;  %v1592_v26 = vmul.f32 %v1526_v57, %v2707_v13  ;;  %v1593_v42 = vmul.f32 %v1526_v57, %v2710_v55 }
 0x461   :  { %v1506_v15 = vpop.permute.xlu1 %1505 }
 0x462   :  { %v1584_v41 = vmul.f32 %v1506_v15, %v2437_v3  ;;  %v1585_v32 = vmul.f32 %v1506_v15, %v2462_v48 }
 0x463   :  { %v1546_v43 = vpop.permute.xlu0 %1545 }
 0x464   :  { %v1618_v47 = vadd.f32 %v1617_v27, %v1584_v41  ;;  %v1647_v14 = vadd.f32 %v1646_v29, %v1585_v32  ;;  %v1600_v25 = vmul.f32 %v1546_v43, %v2697_v33  ;;  %v1601_v35 = vmul.f32 %v1546_v43, %v2700_v12 }
 0x466   :  { %v1648_v8 = vadd.f32 %v1647_v14, %v1587_v2  ;;  %v1619_v46 = vadd.f32 %v1618_v47, %v1586_v58  ;;  %v2828_v47 = vlaneseq }
 0x467   :  { %v1541_v11 = vpop.permute.xlu2 %1540 }
 0x468   :  { %v1620_v28 = vadd.f32 %v1619_v46, %v1588_v21  ;;  %v1649_v18 = vadd.f32 %v1648_v8, %v1589_v50  ;;  %v1598_v13 = vmul.f32 %v1541_v11, %v2727_v56  ;;  %v1599_v55 = vmul.f32 %v1541_v11, %v2730_v51  ;;  %v2826_v56 = vld [vmem:[#allocation7_spill] sm:$0xff]  ;;  %v2827_v51 = vld [vmem:[#allocation8_spill] sm:$0xff] }
 0x469   :  { %v1521_v1 = vpop.permute.xlu1 %1520  ;;  %vm1672_vm5 = vcmp.lt.s32.totalorder %v2828_v47, 256 }
 0x46a   :  { %v1590_v3 = vmul.f32 %v1521_v1, %v2717_v4  ;;  %v1591_v48 = vmul.f32 %v1521_v1, %v2720_v59 }
 0x46c   :  { %v1621_v60 = vadd.f32 %v1620_v28, %v1590_v3  ;;  %v1650_v54 = vadd.f32 %v1649_v18, %v1591_v48 }
 0x46e   :  { %v1651_v37 = vadd.f32 %v1650_v54, %v1593_v42  ;;  %v1622_v9 = vadd.f32 %v1621_v60, %v1592_v26 }
 0x46f   :  { %v1556_v53 = vpop.permute.xlu2 %1555 }
 0x470   :  { %v1623_v40 = vadd.f32 %v1622_v9, %v1594_v23  ;;  %v1652_v38 = vadd.f32 %v1651_v37, %v1595_v0  ;;  %v1604_v39 = vmul.f32 %v1556_v53, %v2826_v56  ;;  %v1605_v24 = vmul.f32 %v1556_v53, %v2827_v51 }
 0x471   :  { %v1536_v20 = vpop.permute.xlu1 %1535 }
 0x472   :  { %v1596_v4 = vmul.f32 %v1536_v20, %v2737_v16  ;;  %v1597_v59 = vmul.f32 %v1536_v20, %v2740_v62  ;;  %v2825_v62 = vld [vmem:[#allocation9_spill] sm:$0xff] }
 0x474   :  { %v1624_v30 = vadd.f32 %v1623_v40, %v1596_v4  ;;  %v1653_v19 = vadd.f32 %v1652_v38, %v1597_v59 }
 0x476   :  { %v1654_v52 = vadd.f32 %v1653_v19, %v1599_v55  ;;  %v1625_v17 = vadd.f32 %v1624_v30, %v1598_v13 }
 0x478   :  { %v1626_v10 = vadd.f32 %v1625_v17, %v1600_v25  ;;  %v1655_v45 = vadd.f32 %v1654_v52, %v1601_v35 }
 0x479   :  { %v1551_v63 = vpop.permute.xlu1 %1550 }
 0x47a   :  { %v1602_v16 = vmul.f32 %v1551_v63, %v2757_v5  ;;  %v1603_v6 = vmul.f32 %v1551_v63, %v2825_v62 }
 0x47c   :  { %v1627_v49 = vadd.f32 %v1626_v10, %v1602_v16  ;;  %v1656_v7 = vadd.f32 %v1655_v45, %v1603_v6 }
 0x47e   :  { %v1628_v61 = vadd.f32 %v1627_v49, %v1604_v39  ;;  %v1657_v31 = vadd.f32 %v1656_v7, %v1605_v24 }
 0x480   :  { %v1629_v22 = vrot.slane %v1628_v61, 4  ;;  %v1658_v33 = vrot.slane %v1657_v31, 4 }
 0x482   :  { %v1630_v44 = vadd.f32 %v1629_v22, %v1628_v61  ;;  %v1659_v12 = vadd.f32 %v1658_v33, %v1657_v31 }
 0x484   :  { %v1631_v15 = vrot.slane %v1630_v44, 2  ;;  %v1660_v27 = vrot.slane %v1659_v12, 2 }
 0x486   :  { %v1632_v29 = vadd.f32 %v1631_v15, %v1630_v44  ;;  %v1661_v41 = vadd.f32 %v1660_v27, %v1659_v12 }
 0x488   :  { %v1633_v32 = vrot.slane %v1632_v29, 1  ;;  %v1662_v5 = vrot.slane %v1661_v41, 1 }
 0x48a   :  { %v1663_v34 = vadd.f32 %v1662_v5, %v1661_v41  ;;  %v1634_v58 = vadd.f32 %v1633_v32, %v1632_v29 }
 0x48c   :  { %v1666_v2 = vrot.slane %v1663_v34, 7 }
 0x48e   :  { %v1668_v14 = vsel %vm1667_vm2, %v1634_v58, %v1666_v2 }
 0x48f   :  { %1674 = vst.msk [vmem:[#allocation4] sm:$0x3] %vm1672_vm5, %v1668_v14 }
 0x490   :  { %1685 = dma.vmem_to_hbm [thread:$0]  %s1681_s29, 32, %s1683_s8, [#allocation5]  }
 0x491   :  { %1811 = dma.done.wait [#allocation5], 32  }
 0x492   :  { %1812 = vsyncadd [#allocation5], 4294967264 }
 0x493   :  { %1690 = vsyncpa [#allocation5], 1 }

</bundles_post_ra>
